<compile_context>
chip_gen: v6e
topology: v6e:2x2x1
jax: 0.10.0
libtpu: 0.0.40
codegen_flags: <defaults>
</compile_context>

<pallas_src>
import math

import jax
import jax.numpy as jnp
from jax.experimental import pallas as pl
from jax.experimental.pallas import tpu as pltpu


# ----------------------------------------------------------------------------
# Fused Pallas kernel
# ----------------------------------------------------------------------------
def _fused_forward_kernel(x_ref,                    # [1, 32, 96]   (H, W*Cin)
                          w1_ref, b1_ref,           # [5, 96, 168], [1, 168]
                          s1_ref, t1_ref,           # [2, 14, 28],  [2, 168, 84]
                          w2_ref, b2_ref,           # [5, 84, 160], [1, 160]
                          s2_ref, t2_ref,           # [2, 5, 10],   [2, 160, 80]
                          fc1w_ref, fc1b_ref,       # [5, 80, 120], [1, 120]
                          fc2w_ref, fc2b_ref,       # [120, 84],    [1, 84]
                          fc3w_ref, fc3b_ref,       # [84, 10],     [1, 10]
                          out_ref):                 # [1, 1, 10]
    f32 = jnp.float32

    def conv_relu_pool(x2d, w_ref, b_ref, s_ref, t_ref):
        # x2d: [H, W*Cin].  w_ref[kh]: banded weight [W*Cin, OW*Cout].
        k = w_ref.shape[0]
        oh = s_ref.shape[2]
        # valid conv, stride 1: accumulate over kernel rows.
        acc = jnp.dot(x2d[0:oh, :], w_ref[0], preferred_element_type=f32)
        for kh in range(1, k):
            acc = acc + jnp.dot(x2d[kh:kh + oh, :], w_ref[kh],
                                preferred_element_type=f32)
        conv = jnp.maximum(acc + b_ref[...], 0.0)          # ReLU, [OH, OW*Cout]
        # 2x2/stride-2 max pool via selection matmuls (selection commutes
        # with max): first pair-max over width, then over height.
        colmax = jnp.maximum(
            jnp.dot(conv, t_ref[0], preferred_element_type=f32),
            jnp.dot(conv, t_ref[1], preferred_element_type=f32))
        return jnp.maximum(
            jnp.dot(s_ref[0], colmax, preferred_element_type=f32),
            jnp.dot(s_ref[1], colmax, preferred_element_type=f32))

    x = x_ref[0]                                            # [32, 96]
    p1 = conv_relu_pool(x, w1_ref, b1_ref, s1_ref, t1_ref)  # [14, 84]
    p2 = conv_relu_pool(p1, w2_ref, b2_ref, s2_ref, t2_ref)  # [5, 80]

    # fc1: contraction over (h, w*16+c); per-row weight slabs encode the
    # torch NCHW flatten order, so no in-kernel flatten/transpose is needed.
    acc = fc1b_ref[...]                                     # [1, 120]
    for h in range(fc1w_ref.shape[0]):                      # 5 rows
        acc = acc + jnp.dot(p2[h:h + 1, :], fc1w_ref[h],
                            preferred_element_type=f32)
    h1 = jnp.maximum(acc, 0.0)                              # [1, 120]
    h2 = jnp.maximum(
        jnp.dot(h1, fc2w_ref[...], preferred_element_type=f32) + fc2b_ref[...],
        0.0)                                                # [1, 84]
    logits = (jnp.dot(h2, fc3w_ref[...], preferred_element_type=f32)
              + fc3b_ref[...])                              # [1, 10]
    out_ref[0] = logits.astype(out_ref.dtype)


def _const_index_map(ndim):
    zeros = (0,) * ndim
    return lambda b: zeros


def _fused_net_pallas(x2d, pp):
    """x2d: [B, 32, 96] (NHWC with W,C folded on lanes) -> logits [B, 10]."""
    B = x2d.shape[0]
    weight_keys = ("w1row", "b1row", "s1", "t1",
                   "w2row", "b2row", "s2", "t2",
                   "fc1w", "fc1b", "fc2w", "fc2b", "fc3w", "fc3b")
    weights = [pp[k] for k in weight_keys]

    in_specs = [pl.BlockSpec((1,) + tuple(x2d.shape[1:]), lambda b: (b, 0, 0))]
    in_specs += [pl.BlockSpec(tuple(w.shape), _const_index_map(w.ndim))
                 for w in weights]

    out3 = pl.pallas_call(
        _fused_forward_kernel,
        out_shape=jax.ShapeDtypeStruct((B, 1, 10), jnp.float32),
        grid=(B,),
        in_specs=in_specs,
        out_specs=pl.BlockSpec((1, 1, 10), lambda b: (b, 0, 0)),
        compiler_params=pltpu.CompilerParams(
            dimension_semantics=("parallel",)),
    )(x2d, *weights)
    return out3.reshape(B, 10)


def net_forward(x_nchw, pp):
    """Reproduces Net.forward. x_nchw: [B, 3, 32, 32] f32 -> [B, 10]."""
    B, C, H, W = x_nchw.shape
    # One cheap layout op on the (tiny) input: NCHW -> NHWC -> [B, H, W*C].
    x2d = jnp.transpose(x_nchw, (0, 2, 3, 1)).reshape(B, H, W * C)
    return _fused_net_pallas(x2d, pp)


# ----------------------------------------------------------------------------
# One-time parameter preparation (all layout plumbing lives here)
# ----------------------------------------------------------------------------
def _conv_row_weights(w_oihw, w_in):
    """[O, Cin, K, K] -> [K, w_in*Cin, OW*O] banded-Toeplitz weights per kh.

    Wrow[kh][(ow+kw)*Cin + c, ow*O + o] = w[o, c, kh, kw].
    """
    O, Cin, K, _ = w_oihw.shape
    OW = w_in - K + 1
    wk = jnp.transpose(w_oihw, (2, 3, 1, 0)).reshape(K, K * Cin, O)
    rows = jnp.zeros((K, w_in * Cin, OW * O), jnp.float32)
    for ow in range(OW):
        rows = rows.at[:, ow * Cin:ow * Cin + K * Cin,
                       ow * O:(ow + 1) * O].set(wk)
    return rows


def _tile_bias(b, reps):
    """b: [O] -> [1, reps*O] with entry at ow*O + o == b[o]."""
    return jnp.tile(b, reps).reshape(1, reps * b.shape[0])


def _row_pool_select(oh):
    """[2, oh//2, oh]: S[a][i, 2i+a] = 1 (even/odd row selection)."""
    i = jnp.arange(oh // 2)[:, None]
    r = jnp.arange(oh)[None, :]
    return jnp.stack([(r == 2 * i).astype(jnp.float32),
                      (r == 2 * i + 1).astype(jnp.float32)], axis=0)


def _col_pool_select(ow, c):
    """[2, ow*c, (ow//2)*c]: T[b][(2j+b)*c + ch, j*c + ch] = 1."""
    src = jnp.arange(ow * c)[:, None]
    dst = jnp.arange((ow // 2) * c)[None, :]
    j = dst // c
    ch = dst % c
    return jnp.stack([(src == (2 * j) * c + ch).astype(jnp.float32),
                      (src == (2 * j + 1) * c + ch).astype(jnp.float32)],
                     axis=0)


def prepare_params(p):
    """Torch-layout params -> kernel-ready layouts (done once at init)."""
    # fc1: bake the NCHW flatten (index c*25 + h*5 + w) into per-row slabs
    # matching the kernel's [h, w*16 + c] activation layout.
    fc1 = p["fc1_w"].reshape(120, 16, 5, 5)                   # [n, c, h, w]
    fc1 = jnp.transpose(fc1, (2, 3, 1, 0)).reshape(5, 5 * 16, 120)
    return {
        "w1row": _conv_row_weights(p["conv1_w"], 32),          # [5, 96, 168]
        "b1row": _tile_bias(p["conv1_b"], 28),                 # [1, 168]
        "s1": _row_pool_select(28),                            # [2, 14, 28]
        "t1": _col_pool_select(28, 6),                         # [2, 168, 84]
        "w2row": _conv_row_weights(p["conv2_w"], 14),          # [5, 84, 160]
        "b2row": _tile_bias(p["conv2_b"], 10),                 # [1, 160]
        "s2": _row_pool_select(10),                            # [2, 5, 10]
        "t2": _col_pool_select(10, 16),                        # [2, 160, 80]
        "fc1w": fc1,                                           # [5, 80, 120]
        "fc1b": p["fc1_b"].reshape(1, 120),
        "fc2w": p["fc2_w"].T,                                  # [120, 84]
        "fc2b": p["fc2_b"].reshape(1, 84),
        "fc3w": p["fc3_w"].T,                                  # [84, 10]
        "fc3b": p["fc3_b"].reshape(1, 10),
    }


def init_params(key):
    """PyTorch-default-style init, torch layouts."""
    ks = jax.random.split(key, 10)

    def uinit(k, shape, fan_in):
        bound = 1.0 / math.sqrt(fan_in)
        return jax.random.uniform(k, shape, jnp.float32, -bound, bound)

    return {
        "conv1_w": uinit(ks[0], (6, 3, 5, 5), 3 * 5 * 5),
        "conv1_b": uinit(ks[1], (6,), 3 * 5 * 5),
        "conv2_w": uinit(ks[2], (16, 6, 5, 5), 6 * 5 * 5),
        "conv2_b": uinit(ks[3], (16,), 6 * 5 * 5),
        "fc1_w":   uinit(ks[4], (120, 400), 400),
        "fc1_b":   uinit(ks[5], (120,), 400),
        "fc2_w":   uinit(ks[6], (84, 120), 120),
        "fc2_b":   uinit(ks[7], (84,), 120),
        "fc3_w":   uinit(ks[8], (10, 84), 84),
        "fc3_b":   uinit(ks[9], (10,), 84),
    }


# ----------------------------------------------------------------------------
# Pure-JAX reference (for correctness check only)
# ----------------------------------------------------------------------------
def net_forward_ref(x_nchw, p):
    x = jnp.transpose(x_nchw, (0, 2, 3, 1))                   # NHWC

    def conv(h, w, b):
        y = jax.lax.conv_general_dilated(
            h, jnp.transpose(w, (2, 3, 1, 0)),                # OIHW -> HWIO
            window_strides=(1, 1), padding="VALID",
            dimension_numbers=("NHWC", "HWIO", "NHWC"))
        return jax.nn.relu(y + b)

    def pool(h):
        return jax.lax.reduce_window(h, -jnp.inf, jax.lax.max,
                                     (1, 2, 2, 1), (1, 2, 2, 1), "VALID")

    h = pool(conv(x, p["conv1_w"], p["conv1_b"]))
    h = pool(conv(h, p["conv2_w"], p["conv2_b"]))
    h = jnp.transpose(h, (0, 3, 1, 2)).reshape(x.shape[0], 16 * 5 * 5)
    h = jax.nn.relu(h @ p["fc1_w"].T + p["fc1_b"])
    h = jax.nn.relu(h @ p["fc2_w"].T + p["fc2_b"])
    return h @ p["fc3_w"].T + p["fc3_b"]


if __name__ == "__main__":
    key = jax.random.PRNGKey(0)
    k_x, k_p = jax.random.split(key)

    # CIFAR-sized input is forced by fc1's 16*5*5 fan-in; batch kept small.
    x = jax.random.normal(k_x, (2, 3, 32, 32), dtype=jnp.float32)
    params = init_params(k_p)
    prepped = prepare_params(params)          # one-time weight re-layout

    fwd = jax.jit(net_forward)
    out = jax.block_until_ready(fwd(x, prepped))

    assert out.shape == (2, 10), out.shape
    assert out.dtype == jnp.float32, out.dtype

    ref = net_forward_ref(x, params)
    assert jnp.allclose(out, ref, rtol=5e-2, atol=5e-2), (out, ref)

    print("KERNEL_OK")
</pallas_src>

<mosaic_0001>
module attributes {stable_mosaic.version = 11 : i64} {
  func.func @_fused_forward_kernel(%arg0: i32, %arg1: memref<1x32x96xf32, #tpu.memory_space<vmem>>, %arg2: memref<5x96x168xf32, #tpu.memory_space<vmem>>, %arg3: memref<1x168xf32, #tpu.memory_space<vmem>>, %arg4: memref<2x14x28xf32, #tpu.memory_space<vmem>>, %arg5: memref<2x168x84xf32, #tpu.memory_space<vmem>>, %arg6: memref<5x84x160xf32, #tpu.memory_space<vmem>>, %arg7: memref<1x160xf32, #tpu.memory_space<vmem>>, %arg8: memref<2x5x10xf32, #tpu.memory_space<vmem>>, %arg9: memref<2x160x80xf32, #tpu.memory_space<vmem>>, %arg10: memref<5x80x120xf32, #tpu.memory_space<vmem>>, %arg11: memref<1x120xf32, #tpu.memory_space<vmem>>, %arg12: memref<120x84xf32, #tpu.memory_space<vmem>>, %arg13: memref<1x84xf32, #tpu.memory_space<vmem>>, %arg14: memref<84x10xf32, #tpu.memory_space<vmem>>, %arg15: memref<1x10xf32, #tpu.memory_space<vmem>>, %arg16: memref<1x1x10xf32, #tpu.memory_space<vmem>>) attributes {dimension_semantics = [#tpu.dimension_semantics<parallel>], iteration_bounds = array<i64: 2>, scalar_prefetch = 0 : i64, scratch_operands = 0 : i64, tpu.core_type = #tpu.core_type<tc>, window_params = [{transform_indices = @transform_0, window_bounds = array<i64: 1, 32, 96>}, {pipeline_mode = #tpu.pipeline_mode<synchronous>, transform_indices = @transform_1, window_bounds = array<i64: 5, 96, 168>}, {pipeline_mode = #tpu.pipeline_mode<synchronous>, transform_indices = @transform_2, window_bounds = array<i64: 1, 168>}, {pipeline_mode = #tpu.pipeline_mode<synchronous>, transform_indices = @transform_3, window_bounds = array<i64: 2, 14, 28>}, {pipeline_mode = #tpu.pipeline_mode<synchronous>, transform_indices = @transform_4, window_bounds = array<i64: 2, 168, 84>}, {pipeline_mode = #tpu.pipeline_mode<synchronous>, transform_indices = @transform_5, window_bounds = array<i64: 5, 84, 160>}, {pipeline_mode = #tpu.pipeline_mode<synchronous>, transform_indices = @transform_6, window_bounds = array<i64: 1, 160>}, {pipeline_mode = #tpu.pipeline_mode<synchronous>, transform_indices = @transform_7, window_bounds = array<i64: 2, 5, 10>}, {pipeline_mode = #tpu.pipeline_mode<synchronous>, transform_indices = @transform_8, window_bounds = array<i64: 2, 160, 80>}, {pipeline_mode = #tpu.pipeline_mode<synchronous>, transform_indices = @transform_9, window_bounds = array<i64: 5, 80, 120>}, {pipeline_mode = #tpu.pipeline_mode<synchronous>, transform_indices = @transform_10, window_bounds = array<i64: 1, 120>}, {pipeline_mode = #tpu.pipeline_mode<synchronous>, transform_indices = @transform_11, window_bounds = array<i64: 120, 84>}, {pipeline_mode = #tpu.pipeline_mode<synchronous>, transform_indices = @transform_12, window_bounds = array<i64: 1, 84>}, {pipeline_mode = #tpu.pipeline_mode<synchronous>, transform_indices = @transform_13, window_bounds = array<i64: 84, 10>}, {pipeline_mode = #tpu.pipeline_mode<synchronous>, transform_indices = @transform_14, window_bounds = array<i64: 1, 10>}, {transform_indices = @transform_15, window_bounds = array<i64: 1, 1, 10>}]} {
    %c0 = arith.constant 0 : index
    %c0_0 = arith.constant 0 : index
    %c0_1 = arith.constant 0 : index
    %0 = vector.load %arg1[%c0, %c0_0, %c0_1] : memref<1x32x96xf32, #tpu.memory_space<vmem>>, vector<1x32x96xf32>
    %1 = vector.shape_cast %0 : vector<1x32x96xf32> to vector<32x96xf32>
    %2 = vector.extract_strided_slice %1 {offsets = [0, 0], sizes = [28, 96], strides = [1, 1]} : vector<32x96xf32> to vector<28x96xf32>
    %c0_2 = arith.constant 0 : index
    %c0_3 = arith.constant 0 : index
    %c0_4 = arith.constant 0 : index
    %3 = vector.load %arg2[%c0_2, %c0_3, %c0_4] : memref<5x96x168xf32, #tpu.memory_space<vmem>>, vector<1x96x168xf32>
    %4 = vector.shape_cast %3 : vector<1x96x168xf32> to vector<96x168xf32>
    %cst = arith.constant dense<0.000000e+00> : vector<28x168xf32>
    %5 = tpu.matmul %2, %4, %cst {dimension_numbers = #tpu.dot_dimension_numbers<[1], [0], [0], [1], [0, 0, 1, 1], [], []>} : vector<28x96xf32>, vector<96x168xf32>, vector<28x168xf32> -> vector<28x168xf32>
    %6 = vector.extract_strided_slice %1 {offsets = [1, 0], sizes = [28, 96], strides = [1, 1]} : vector<32x96xf32> to vector<28x96xf32>
    %c1 = arith.constant 1 : index
    %c0_5 = arith.constant 0 : index
    %c0_6 = arith.constant 0 : index
    %7 = vector.load %arg2[%c1, %c0_5, %c0_6] : memref<5x96x168xf32, #tpu.memory_space<vmem>>, vector<1x96x168xf32>
    %8 = vector.shape_cast %7 : vector<1x96x168xf32> to vector<96x168xf32>
    %cst_7 = arith.constant dense<0.000000e+00> : vector<28x168xf32>
    %9 = tpu.matmul %6, %8, %cst_7 {dimension_numbers = #tpu.dot_dimension_numbers<[1], [0], [0], [1], [0, 0, 1, 1], [], []>} : vector<28x96xf32>, vector<96x168xf32>, vector<28x168xf32> -> vector<28x168xf32>
    %10 = arith.addf %5, %9 : vector<28x168xf32>
    %11 = vector.extract_strided_slice %1 {offsets = [2, 0], sizes = [28, 96], strides = [1, 1]} : vector<32x96xf32> to vector<28x96xf32>
    %c2 = arith.constant 2 : index
    %c0_8 = arith.constant 0 : index
    %c0_9 = arith.constant 0 : index
    %12 = vector.load %arg2[%c2, %c0_8, %c0_9] : memref<5x96x168xf32, #tpu.memory_space<vmem>>, vector<1x96x168xf32>
    %13 = vector.shape_cast %12 : vector<1x96x168xf32> to vector<96x168xf32>
    %cst_10 = arith.constant dense<0.000000e+00> : vector<28x168xf32>
    %14 = tpu.matmul %11, %13, %cst_10 {dimension_numbers = #tpu.dot_dimension_numbers<[1], [0], [0], [1], [0, 0, 1, 1], [], []>} : vector<28x96xf32>, vector<96x168xf32>, vector<28x168xf32> -> vector<28x168xf32>
    %15 = arith.addf %10, %14 : vector<28x168xf32>
    %16 = vector.extract_strided_slice %1 {offsets = [3, 0], sizes = [28, 96], strides = [1, 1]} : vector<32x96xf32> to vector<28x96xf32>
    %c3 = arith.constant 3 : index
    %c0_11 = arith.constant 0 : index
    %c0_12 = arith.constant 0 : index
    %17 = vector.load %arg2[%c3, %c0_11, %c0_12] : memref<5x96x168xf32, #tpu.memory_space<vmem>>, vector<1x96x168xf32>
    %18 = vector.shape_cast %17 : vector<1x96x168xf32> to vector<96x168xf32>
    %cst_13 = arith.constant dense<0.000000e+00> : vector<28x168xf32>
    %19 = tpu.matmul %16, %18, %cst_13 {dimension_numbers = #tpu.dot_dimension_numbers<[1], [0], [0], [1], [0, 0, 1, 1], [], []>} : vector<28x96xf32>, vector<96x168xf32>, vector<28x168xf32> -> vector<28x168xf32>
    %20 = arith.addf %15, %19 : vector<28x168xf32>
    %21 = vector.extract_strided_slice %1 {offsets = [4, 0], sizes = [28, 96], strides = [1, 1]} : vector<32x96xf32> to vector<28x96xf32>
    %c4 = arith.constant 4 : index
    %c0_14 = arith.constant 0 : index
    %c0_15 = arith.constant 0 : index
    %22 = vector.load %arg2[%c4, %c0_14, %c0_15] : memref<5x96x168xf32, #tpu.memory_space<vmem>>, vector<1x96x168xf32>
    %23 = vector.shape_cast %22 : vector<1x96x168xf32> to vector<96x168xf32>
    %cst_16 = arith.constant dense<0.000000e+00> : vector<28x168xf32>
    %24 = tpu.matmul %21, %23, %cst_16 {dimension_numbers = #tpu.dot_dimension_numbers<[1], [0], [0], [1], [0, 0, 1, 1], [], []>} : vector<28x96xf32>, vector<96x168xf32>, vector<28x168xf32> -> vector<28x168xf32>
    %25 = arith.addf %20, %24 : vector<28x168xf32>
    %c0_17 = arith.constant 0 : index
    %c0_18 = arith.constant 0 : index
    %26 = vector.load %arg3[%c0_17, %c0_18] : memref<1x168xf32, #tpu.memory_space<vmem>>, vector<1x168xf32>
    %27 = vector.broadcast %26 : vector<1x168xf32> to vector<28x168xf32>
    %28 = arith.addf %25, %27 : vector<28x168xf32>
    %cst_19 = arith.constant 0.000000e+00 : f32
    %29 = vector.broadcast %cst_19 : f32 to vector<28x168xf32>
    %30 = arith.maximumf %28, %29 : vector<28x168xf32>
    %c0_20 = arith.constant 0 : index
    %c0_21 = arith.constant 0 : index
    %c0_22 = arith.constant 0 : index
    %31 = vector.load %arg5[%c0_20, %c0_21, %c0_22] : memref<2x168x84xf32, #tpu.memory_space<vmem>>, vector<1x168x84xf32>
    %32 = vector.shape_cast %31 : vector<1x168x84xf32> to vector<168x84xf32>
    %cst_23 = arith.constant dense<0.000000e+00> : vector<28x84xf32>
    %33 = tpu.matmul %30, %32, %cst_23 {dimension_numbers = #tpu.dot_dimension_numbers<[1], [0], [0], [1], [0, 0, 1, 1], [], []>} : vector<28x168xf32>, vector<168x84xf32>, vector<28x84xf32> -> vector<28x84xf32>
    %c1_24 = arith.constant 1 : index
    %c0_25 = arith.constant 0 : index
    %c0_26 = arith.constant 0 : index
    %34 = vector.load %arg5[%c1_24, %c0_25, %c0_26] : memref<2x168x84xf32, #tpu.memory_space<vmem>>, vector<1x168x84xf32>
    %35 = vector.shape_cast %34 : vector<1x168x84xf32> to vector<168x84xf32>
    %cst_27 = arith.constant dense<0.000000e+00> : vector<28x84xf32>
    %36 = tpu.matmul %30, %35, %cst_27 {dimension_numbers = #tpu.dot_dimension_numbers<[1], [0], [0], [1], [0, 0, 1, 1], [], []>} : vector<28x168xf32>, vector<168x84xf32>, vector<28x84xf32> -> vector<28x84xf32>
    %37 = arith.maximumf %33, %36 : vector<28x84xf32>
    %c0_28 = arith.constant 0 : index
    %c0_29 = arith.constant 0 : index
    %c0_30 = arith.constant 0 : index
    %38 = vector.load %arg4[%c0_28, %c0_29, %c0_30] : memref<2x14x28xf32, #tpu.memory_space<vmem>>, vector<1x14x28xf32>
    %39 = vector.shape_cast %38 : vector<1x14x28xf32> to vector<14x28xf32>
    %cst_31 = arith.constant dense<0.000000e+00> : vector<14x84xf32>
    %40 = tpu.matmul %39, %37, %cst_31 {dimension_numbers = #tpu.dot_dimension_numbers<[1], [0], [0], [1], [0, 0, 1, 1], [], []>} : vector<14x28xf32>, vector<28x84xf32>, vector<14x84xf32> -> vector<14x84xf32>
    %c1_32 = arith.constant 1 : index
    %c0_33 = arith.constant 0 : index
    %c0_34 = arith.constant 0 : index
    %41 = vector.load %arg4[%c1_32, %c0_33, %c0_34] : memref<2x14x28xf32, #tpu.memory_space<vmem>>, vector<1x14x28xf32>
    %42 = vector.shape_cast %41 : vector<1x14x28xf32> to vector<14x28xf32>
    %cst_35 = arith.constant dense<0.000000e+00> : vector<14x84xf32>
    %43 = tpu.matmul %42, %37, %cst_35 {dimension_numbers = #tpu.dot_dimension_numbers<[1], [0], [0], [1], [0, 0, 1, 1], [], []>} : vector<14x28xf32>, vector<28x84xf32>, vector<14x84xf32> -> vector<14x84xf32>
    %44 = arith.maximumf %40, %43 : vector<14x84xf32>
    %45 = vector.extract_strided_slice %44 {offsets = [0, 0], sizes = [10, 84], strides = [1, 1]} : vector<14x84xf32> to vector<10x84xf32>
    %c0_36 = arith.constant 0 : index
    %c0_37 = arith.constant 0 : index
    %c0_38 = arith.constant 0 : index
    %46 = vector.load %arg6[%c0_36, %c0_37, %c0_38] : memref<5x84x160xf32, #tpu.memory_space<vmem>>, vector<1x84x160xf32>
    %47 = vector.shape_cast %46 : vector<1x84x160xf32> to vector<84x160xf32>
    %cst_39 = arith.constant dense<0.000000e+00> : vector<10x160xf32>
    %48 = tpu.matmul %45, %47, %cst_39 {dimension_numbers = #tpu.dot_dimension_numbers<[1], [0], [0], [1], [0, 0, 1, 1], [], []>} : vector<10x84xf32>, vector<84x160xf32>, vector<10x160xf32> -> vector<10x160xf32>
    %49 = vector.extract_strided_slice %44 {offsets = [1, 0], sizes = [10, 84], strides = [1, 1]} : vector<14x84xf32> to vector<10x84xf32>
    %c1_40 = arith.constant 1 : index
    %c0_41 = arith.constant 0 : index
    %c0_42 = arith.constant 0 : index
    %50 = vector.load %arg6[%c1_40, %c0_41, %c0_42] : memref<5x84x160xf32, #tpu.memory_space<vmem>>, vector<1x84x160xf32>
    %51 = vector.shape_cast %50 : vector<1x84x160xf32> to vector<84x160xf32>
    %cst_43 = arith.constant dense<0.000000e+00> : vector<10x160xf32>
    %52 = tpu.matmul %49, %51, %cst_43 {dimension_numbers = #tpu.dot_dimension_numbers<[1], [0], [0], [1], [0, 0, 1, 1], [], []>} : vector<10x84xf32>, vector<84x160xf32>, vector<10x160xf32> -> vector<10x160xf32>
    %53 = arith.addf %48, %52 : vector<10x160xf32>
    %54 = vector.extract_strided_slice %44 {offsets = [2, 0], sizes = [10, 84], strides = [1, 1]} : vector<14x84xf32> to vector<10x84xf32>
    %c2_44 = arith.constant 2 : index
    %c0_45 = arith.constant 0 : index
    %c0_46 = arith.constant 0 : index
    %55 = vector.load %arg6[%c2_44, %c0_45, %c0_46] : memref<5x84x160xf32, #tpu.memory_space<vmem>>, vector<1x84x160xf32>
    %56 = vector.shape_cast %55 : vector<1x84x160xf32> to vector<84x160xf32>
    %cst_47 = arith.constant dense<0.000000e+00> : vector<10x160xf32>
    %57 = tpu.matmul %54, %56, %cst_47 {dimension_numbers = #tpu.dot_dimension_numbers<[1], [0], [0], [1], [0, 0, 1, 1], [], []>} : vector<10x84xf32>, vector<84x160xf32>, vector<10x160xf32> -> vector<10x160xf32>
    %58 = arith.addf %53, %57 : vector<10x160xf32>
    %59 = vector.extract_strided_slice %44 {offsets = [3, 0], sizes = [10, 84], strides = [1, 1]} : vector<14x84xf32> to vector<10x84xf32>
    %c3_48 = arith.constant 3 : index
    %c0_49 = arith.constant 0 : index
    %c0_50 = arith.constant 0 : index
    %60 = vector.load %arg6[%c3_48, %c0_49, %c0_50] : memref<5x84x160xf32, #tpu.memory_space<vmem>>, vector<1x84x160xf32>
    %61 = vector.shape_cast %60 : vector<1x84x160xf32> to vector<84x160xf32>
    %cst_51 = arith.constant dense<0.000000e+00> : vector<10x160xf32>
    %62 = tpu.matmul %59, %61, %cst_51 {dimension_numbers = #tpu.dot_dimension_numbers<[1], [0], [0], [1], [0, 0, 1, 1], [], []>} : vector<10x84xf32>, vector<84x160xf32>, vector<10x160xf32> -> vector<10x160xf32>
    %63 = arith.addf %58, %62 : vector<10x160xf32>
    %64 = vector.extract_strided_slice %44 {offsets = [4, 0], sizes = [10, 84], strides = [1, 1]} : vector<14x84xf32> to vector<10x84xf32>
    %c4_52 = arith.constant 4 : index
    %c0_53 = arith.constant 0 : index
    %c0_54 = arith.constant 0 : index
    %65 = vector.load %arg6[%c4_52, %c0_53, %c0_54] : memref<5x84x160xf32, #tpu.memory_space<vmem>>, vector<1x84x160xf32>
    %66 = vector.shape_cast %65 : vector<1x84x160xf32> to vector<84x160xf32>
    %cst_55 = arith.constant dense<0.000000e+00> : vector<10x160xf32>
    %67 = tpu.matmul %64, %66, %cst_55 {dimension_numbers = #tpu.dot_dimension_numbers<[1], [0], [0], [1], [0, 0, 1, 1], [], []>} : vector<10x84xf32>, vector<84x160xf32>, vector<10x160xf32> -> vector<10x160xf32>
    %68 = arith.addf %63, %67 : vector<10x160xf32>
    %c0_56 = arith.constant 0 : index
    %c0_57 = arith.constant 0 : index
    %69 = vector.load %arg7[%c0_56, %c0_57] : memref<1x160xf32, #tpu.memory_space<vmem>>, vector<1x160xf32>
    %70 = vector.broadcast %69 : vector<1x160xf32> to vector<10x160xf32>
    %71 = arith.addf %68, %70 : vector<10x160xf32>
    %cst_58 = arith.constant 0.000000e+00 : f32
    %72 = vector.broadcast %cst_58 : f32 to vector<10x160xf32>
    %73 = arith.maximumf %71, %72 : vector<10x160xf32>
    %c0_59 = arith.constant 0 : index
    %c0_60 = arith.constant 0 : index
    %c0_61 = arith.constant 0 : index
    %74 = vector.load %arg9[%c0_59, %c0_60, %c0_61] : memref<2x160x80xf32, #tpu.memory_space<vmem>>, vector<1x160x80xf32>
    %75 = vector.shape_cast %74 : vector<1x160x80xf32> to vector<160x80xf32>
    %cst_62 = arith.constant dense<0.000000e+00> : vector<10x80xf32>
    %76 = tpu.matmul %73, %75, %cst_62 {dimension_numbers = #tpu.dot_dimension_numbers<[1], [0], [0], [1], [0, 0, 1, 1], [], []>} : vector<10x160xf32>, vector<160x80xf32>, vector<10x80xf32> -> vector<10x80xf32>
    %c1_63 = arith.constant 1 : index
    %c0_64 = arith.constant 0 : index
    %c0_65 = arith.constant 0 : index
    %77 = vector.load %arg9[%c1_63, %c0_64, %c0_65] : memref<2x160x80xf32, #tpu.memory_space<vmem>>, vector<1x160x80xf32>
    %78 = vector.shape_cast %77 : vector<1x160x80xf32> to vector<160x80xf32>
    %cst_66 = arith.constant dense<0.000000e+00> : vector<10x80xf32>
    %79 = tpu.matmul %73, %78, %cst_66 {dimension_numbers = #tpu.dot_dimension_numbers<[1], [0], [0], [1], [0, 0, 1, 1], [], []>} : vector<10x160xf32>, vector<160x80xf32>, vector<10x80xf32> -> vector<10x80xf32>
    %80 = arith.maximumf %76, %79 : vector<10x80xf32>
    %c0_67 = arith.constant 0 : index
    %c0_68 = arith.constant 0 : index
    %c0_69 = arith.constant 0 : index
    %81 = vector.load %arg8[%c0_67, %c0_68, %c0_69] : memref<2x5x10xf32, #tpu.memory_space<vmem>>, vector<1x5x10xf32>
    %82 = vector.shape_cast %81 : vector<1x5x10xf32> to vector<5x10xf32>
    %cst_70 = arith.constant dense<0.000000e+00> : vector<5x80xf32>
    %83 = tpu.matmul %82, %80, %cst_70 {dimension_numbers = #tpu.dot_dimension_numbers<[1], [0], [0], [1], [0, 0, 1, 1], [], []>} : vector<5x10xf32>, vector<10x80xf32>, vector<5x80xf32> -> vector<5x80xf32>
    %c1_71 = arith.constant 1 : index
    %c0_72 = arith.constant 0 : index
    %c0_73 = arith.constant 0 : index
    %84 = vector.load %arg8[%c1_71, %c0_72, %c0_73] : memref<2x5x10xf32, #tpu.memory_space<vmem>>, vector<1x5x10xf32>
    %85 = vector.shape_cast %84 : vector<1x5x10xf32> to vector<5x10xf32>
    %cst_74 = arith.constant dense<0.000000e+00> : vector<5x80xf32>
    %86 = tpu.matmul %85, %80, %cst_74 {dimension_numbers = #tpu.dot_dimension_numbers<[1], [0], [0], [1], [0, 0, 1, 1], [], []>} : vector<5x10xf32>, vector<10x80xf32>, vector<5x80xf32> -> vector<5x80xf32>
    %87 = arith.maximumf %83, %86 : vector<5x80xf32>
    %c0_75 = arith.constant 0 : index
    %c0_76 = arith.constant 0 : index
    %88 = vector.load %arg11[%c0_75, %c0_76] : memref<1x120xf32, #tpu.memory_space<vmem>>, vector<1x120xf32>
    %89 = vector.extract_strided_slice %87 {offsets = [0, 0], sizes = [1, 80], strides = [1, 1]} : vector<5x80xf32> to vector<1x80xf32>
    %c0_77 = arith.constant 0 : index
    %c0_78 = arith.constant 0 : index
    %c0_79 = arith.constant 0 : index
    %90 = vector.load %arg10[%c0_77, %c0_78, %c0_79] : memref<5x80x120xf32, #tpu.memory_space<vmem>>, vector<1x80x120xf32>
    %91 = vector.shape_cast %90 : vector<1x80x120xf32> to vector<80x120xf32>
    %cst_80 = arith.constant dense<0.000000e+00> : vector<1x120xf32>
    %92 = tpu.matmul %89, %91, %cst_80 {dimension_numbers = #tpu.dot_dimension_numbers<[1], [0], [0], [1], [0, 0, 1, 1], [], []>} : vector<1x80xf32>, vector<80x120xf32>, vector<1x120xf32> -> vector<1x120xf32>
    %93 = arith.addf %88, %92 : vector<1x120xf32>
    %94 = vector.extract_strided_slice %87 {offsets = [1, 0], sizes = [1, 80], strides = [1, 1]} : vector<5x80xf32> to vector<1x80xf32>
    %c1_81 = arith.constant 1 : index
    %c0_82 = arith.constant 0 : index
    %c0_83 = arith.constant 0 : index
    %95 = vector.load %arg10[%c1_81, %c0_82, %c0_83] : memref<5x80x120xf32, #tpu.memory_space<vmem>>, vector<1x80x120xf32>
    %96 = vector.shape_cast %95 : vector<1x80x120xf32> to vector<80x120xf32>
    %cst_84 = arith.constant dense<0.000000e+00> : vector<1x120xf32>
    %97 = tpu.matmul %94, %96, %cst_84 {dimension_numbers = #tpu.dot_dimension_numbers<[1], [0], [0], [1], [0, 0, 1, 1], [], []>} : vector<1x80xf32>, vector<80x120xf32>, vector<1x120xf32> -> vector<1x120xf32>
    %98 = arith.addf %93, %97 : vector<1x120xf32>
    %99 = vector.extract_strided_slice %87 {offsets = [2, 0], sizes = [1, 80], strides = [1, 1]} : vector<5x80xf32> to vector<1x80xf32>
    %c2_85 = arith.constant 2 : index
    %c0_86 = arith.constant 0 : index
    %c0_87 = arith.constant 0 : index
    %100 = vector.load %arg10[%c2_85, %c0_86, %c0_87] : memref<5x80x120xf32, #tpu.memory_space<vmem>>, vector<1x80x120xf32>
    %101 = vector.shape_cast %100 : vector<1x80x120xf32> to vector<80x120xf32>
    %cst_88 = arith.constant dense<0.000000e+00> : vector<1x120xf32>
    %102 = tpu.matmul %99, %101, %cst_88 {dimension_numbers = #tpu.dot_dimension_numbers<[1], [0], [0], [1], [0, 0, 1, 1], [], []>} : vector<1x80xf32>, vector<80x120xf32>, vector<1x120xf32> -> vector<1x120xf32>
    %103 = arith.addf %98, %102 : vector<1x120xf32>
    %104 = vector.extract_strided_slice %87 {offsets = [3, 0], sizes = [1, 80], strides = [1, 1]} : vector<5x80xf32> to vector<1x80xf32>
    %c3_89 = arith.constant 3 : index
    %c0_90 = arith.constant 0 : index
    %c0_91 = arith.constant 0 : index
    %105 = vector.load %arg10[%c3_89, %c0_90, %c0_91] : memref<5x80x120xf32, #tpu.memory_space<vmem>>, vector<1x80x120xf32>
    %106 = vector.shape_cast %105 : vector<1x80x120xf32> to vector<80x120xf32>
    %cst_92 = arith.constant dense<0.000000e+00> : vector<1x120xf32>
    %107 = tpu.matmul %104, %106, %cst_92 {dimension_numbers = #tpu.dot_dimension_numbers<[1], [0], [0], [1], [0, 0, 1, 1], [], []>} : vector<1x80xf32>, vector<80x120xf32>, vector<1x120xf32> -> vector<1x120xf32>
    %108 = arith.addf %103, %107 : vector<1x120xf32>
    %109 = vector.extract_strided_slice %87 {offsets = [4, 0], sizes = [1, 80], strides = [1, 1]} : vector<5x80xf32> to vector<1x80xf32>
    %c4_93 = arith.constant 4 : index
    %c0_94 = arith.constant 0 : index
    %c0_95 = arith.constant 0 : index
    %110 = vector.load %arg10[%c4_93, %c0_94, %c0_95] : memref<5x80x120xf32, #tpu.memory_space<vmem>>, vector<1x80x120xf32>
    %111 = vector.shape_cast %110 : vector<1x80x120xf32> to vector<80x120xf32>
    %cst_96 = arith.constant dense<0.000000e+00> : vector<1x120xf32>
    %112 = tpu.matmul %109, %111, %cst_96 {dimension_numbers = #tpu.dot_dimension_numbers<[1], [0], [0], [1], [0, 0, 1, 1], [], []>} : vector<1x80xf32>, vector<80x120xf32>, vector<1x120xf32> -> vector<1x120xf32>
    %113 = arith.addf %108, %112 : vector<1x120xf32>
    %cst_97 = arith.constant 0.000000e+00 : f32
    %114 = vector.broadcast %cst_97 : f32 to vector<1x120xf32>
    %115 = arith.maximumf %113, %114 : vector<1x120xf32>
    %c0_98 = arith.constant 0 : index
    %c0_99 = arith.constant 0 : index
    %116 = vector.load %arg12[%c0_98, %c0_99] : memref<120x84xf32, #tpu.memory_space<vmem>>, vector<120x84xf32>
    %cst_100 = arith.constant dense<0.000000e+00> : vector<1x84xf32>
    %117 = tpu.matmul %115, %116, %cst_100 {dimension_numbers = #tpu.dot_dimension_numbers<[1], [0], [0], [1], [0, 0, 1, 1], [], []>} : vector<1x120xf32>, vector<120x84xf32>, vector<1x84xf32> -> vector<1x84xf32>
    %c0_101 = arith.constant 0 : index
    %c0_102 = arith.constant 0 : index
    %118 = vector.load %arg13[%c0_101, %c0_102] : memref<1x84xf32, #tpu.memory_space<vmem>>, vector<1x84xf32>
    %119 = arith.addf %117, %118 : vector<1x84xf32>
    %cst_103 = arith.constant 0.000000e+00 : f32
    %120 = vector.broadcast %cst_103 : f32 to vector<1x84xf32>
    %121 = arith.maximumf %119, %120 : vector<1x84xf32>
    %c0_104 = arith.constant 0 : index
    %c0_105 = arith.constant 0 : index
    %122 = vector.load %arg14[%c0_104, %c0_105] : memref<84x10xf32, #tpu.memory_space<vmem>>, vector<84x10xf32>
    %cst_106 = arith.constant dense<0.000000e+00> : vector<1x10xf32>
    %123 = tpu.matmul %121, %122, %cst_106 {dimension_numbers = #tpu.dot_dimension_numbers<[1], [0], [0], [1], [0, 0, 1, 1], [], []>} : vector<1x84xf32>, vector<84x10xf32>, vector<1x10xf32> -> vector<1x10xf32>
    %c0_107 = arith.constant 0 : index
    %c0_108 = arith.constant 0 : index
    %124 = vector.load %arg15[%c0_107, %c0_108] : memref<1x10xf32, #tpu.memory_space<vmem>>, vector<1x10xf32>
    %125 = arith.addf %123, %124 : vector<1x10xf32>
    %c0_109 = arith.constant 0 : index
    %c0_110 = arith.constant 0 : index
    %c0_111 = arith.constant 0 : index
    %126 = vector.load %arg16[%c0_109, %c0_110, %c0_111] : memref<1x1x10xf32, #tpu.memory_space<vmem>>, vector<1x1x10xf32>
    %127 = vector.shape_cast %126 : vector<1x1x10xf32> to vector<1x10xf32>
    %128 = vector.shape_cast %125 : vector<1x10xf32> to vector<1x1x10xf32>
    tpu.vector_store %arg16[%c0_109, %c0_110, %c0_111], %128 {strides = array<i32>} : memref<1x1x10xf32, #tpu.memory_space<vmem>>, vector<1x1x10xf32>,
    return
  }
  func.func @transform_0(%arg0: i32) -> (i32, i32, i32) {
    %c0_i32 = arith.constant 0 : i32
    %c0_i32_0 = arith.constant 0 : i32
    %c0_i32_1 = arith.constant 0 : i32
    return %arg0, %c0_i32, %c0_i32_0 : i32, i32, i32
  }
  func.func @transform_1(%arg0: i32) -> (i32, i32, i32) {
    %c0_i32 = arith.constant 0 : i32
    %c0_i32_0 = arith.constant 0 : i32
    %c0_i32_1 = arith.constant 0 : i32
    %c0_i32_2 = arith.constant 0 : i32
    return %c0_i32, %c0_i32_0, %c0_i32_1 : i32, i32, i32
  }
  func.func @transform_2(%arg0: i32) -> (i32, i32) {
    %c0_i32 = arith.constant 0 : i32
    %c0_i32_0 = arith.constant 0 : i32
    %c0_i32_1 = arith.constant 0 : i32
    return %c0_i32, %c0_i32_0 : i32, i32
  }
  func.func @transform_3(%arg0: i32) -> (i32, i32, i32) {
    %c0_i32 = arith.constant 0 : i32
    %c0_i32_0 = arith.constant 0 : i32
    %c0_i32_1 = arith.constant 0 : i32
    %c0_i32_2 = arith.constant 0 : i32
    return %c0_i32, %c0_i32_0, %c0_i32_1 : i32, i32, i32
  }
  func.func @transform_4(%arg0: i32) -> (i32, i32, i32) {
    %c0_i32 = arith.constant 0 : i32
    %c0_i32_0 = arith.constant 0 : i32
    %c0_i32_1 = arith.constant 0 : i32
    %c0_i32_2 = arith.constant 0 : i32
    return %c0_i32, %c0_i32_0, %c0_i32_1 : i32, i32, i32
  }
  func.func @transform_5(%arg0: i32) -> (i32, i32, i32) {
    %c0_i32 = arith.constant 0 : i32
    %c0_i32_0 = arith.constant 0 : i32
    %c0_i32_1 = arith.constant 0 : i32
    %c0_i32_2 = arith.constant 0 : i32
    return %c0_i32, %c0_i32_0, %c0_i32_1 : i32, i32, i32
  }
  func.func @transform_6(%arg0: i32) -> (i32, i32) {
    %c0_i32 = arith.constant 0 : i32
    %c0_i32_0 = arith.constant 0 : i32
    %c0_i32_1 = arith.constant 0 : i32
    return %c0_i32, %c0_i32_0 : i32, i32
  }
  func.func @transform_7(%arg0: i32) -> (i32, i32, i32) {
    %c0_i32 = arith.constant 0 : i32
    %c0_i32_0 = arith.constant 0 : i32
    %c0_i32_1 = arith.constant 0 : i32
    %c0_i32_2 = arith.constant 0 : i32
    return %c0_i32, %c0_i32_0, %c0_i32_1 : i32, i32, i32
  }
  func.func @transform_8(%arg0: i32) -> (i32, i32, i32) {
    %c0_i32 = arith.constant 0 : i32
    %c0_i32_0 = arith.constant 0 : i32
    %c0_i32_1 = arith.constant 0 : i32
    %c0_i32_2 = arith.constant 0 : i32
    return %c0_i32, %c0_i32_0, %c0_i32_1 : i32, i32, i32
  }
  func.func @transform_9(%arg0: i32) -> (i32, i32, i32) {
    %c0_i32 = arith.constant 0 : i32
    %c0_i32_0 = arith.constant 0 : i32
    %c0_i32_1 = arith.constant 0 : i32
    %c0_i32_2 = arith.constant 0 : i32
    return %c0_i32, %c0_i32_0, %c0_i32_1 : i32, i32, i32
  }
  func.func @transform_10(%arg0: i32) -> (i32, i32) {
    %c0_i32 = arith.constant 0 : i32
    %c0_i32_0 = arith.constant 0 : i32
    %c0_i32_1 = arith.constant 0 : i32
    return %c0_i32, %c0_i32_0 : i32, i32
  }
  func.func @transform_11(%arg0: i32) -> (i32, i32) {
    %c0_i32 = arith.constant 0 : i32
    %c0_i32_0 = arith.constant 0 : i32
    %c0_i32_1 = arith.constant 0 : i32
    return %c0_i32, %c0_i32_0 : i32, i32
  }
  func.func @transform_12(%arg0: i32) -> (i32, i32) {
    %c0_i32 = arith.constant 0 : i32
    %c0_i32_0 = arith.constant 0 : i32
    %c0_i32_1 = arith.constant 0 : i32
    return %c0_i32, %c0_i32_0 : i32, i32
  }
  func.func @transform_13(%arg0: i32) -> (i32, i32) {
    %c0_i32 = arith.constant 0 : i32
    %c0_i32_0 = arith.constant 0 : i32
    %c0_i32_1 = arith.constant 0 : i32
    return %c0_i32, %c0_i32_0 : i32, i32
  }
  func.func @transform_14(%arg0: i32) -> (i32, i32) {
    %c0_i32 = arith.constant 0 : i32
    %c0_i32_0 = arith.constant 0 : i32
    %c0_i32_1 = arith.constant 0 : i32
    return %c0_i32, %c0_i32_0 : i32, i32
  }
  func.func @transform_15(%arg0: i32) -> (i32, i32, i32) {
    %c0_i32 = arith.constant 0 : i32
    %c0_i32_0 = arith.constant 0 : i32
    %c0_i32_1 = arith.constant 0 : i32
    return %arg0, %c0_i32, %c0_i32_0 : i32, i32, i32
  }
}

</mosaic_0001>

<bundles_post_ra>
// kernel: net_forward.1
= control target key start
LH: loop header
LB: loop body
LE: loop exit
PB: predicated region body
PF: predicated region fallthrough
CT: control target
= control target key end

     0   :  { %20 = vsyncpa [#allocation3], 0  ;;  %s5723_s0 = inlined_call_operand.vmem [shape: f32[2,32,96], index: 0, kind: input, shape index: {}]   ;;  %s5724_s1 = inlined_call_operand.vmem [shape: f32[5,96,168], index: 1, kind: input, shape index: {}]   ;;  %s5725_s2 = inlined_call_operand.vmem [shape: f32[1,168], index: 2, kind: input, shape index: {}]   ;;  %s5726_s3 = inlined_call_operand.vmem [shape: f32[2,14,28], index: 3, kind: input, shape index: {}]   ;;  %s5727_s4 = inlined_call_operand.vmem [shape: f32[2,168,84], index: 4, kind: input, shape index: {}]   ;;  %s5728_s5 = inlined_call_operand.vmem [shape: f32[5,84,160], index: 5, kind: input, shape index: {}]   ;;  %s5729_s6 = inlined_call_operand.vmem [shape: f32[1,160], index: 6, kind: input, shape index: {}]   ;;  %s5730_s7 = inlined_call_operand.vmem [shape: f32[2,5,10], index: 7, kind: input, shape index: {}]   ;;  %s5731_s8 = inlined_call_operand.vmem [shape: f32[2,160,80], index: 8, kind: input, shape index: {}]   ;;  %s5732_s9 = inlined_call_operand.vmem [shape: f32[5,80,120], index: 9, kind: input, shape index: {}]   ;;  %s5733_s10 = inlined_call_operand.vmem [shape: f32[1,120], index: 10, kind: input, shape index: {}]   ;;  %s5734_s11 = inlined_call_operand.vmem [shape: f32[120,84], index: 11, kind: input, shape index: {}]   ;;  %s5735_s12 = inlined_call_operand.vmem [shape: f32[1,84], index: 12, kind: input, shape index: {}]   ;;  %s5736_s13 = inlined_call_operand.vmem [shape: f32[84,10], index: 13, kind: input, shape index: {}]   ;;  %s5737_s14 = inlined_call_operand.vmem [shape: f32[1,10], index: 14, kind: input, shape index: {}]   ;;  %s5738_s15 = inlined_call_operand.hbm [shape: f32[2,1,10], index: 15, kind: output, shape index: {}]  }
   0x1   :  { %22 = vsyncpa [#allocation3 + $0x1], 0  ;;  %s4068_s18 = smov 0   ;;  %s4070_s19 = smov 0  }
   0x2   :  { %s4072_s20 = smov 0   ;;  %s4074_s21 = smov 0  }
   0x3 LB: > { %5745 = sst [smem:[#allocation5_spill]] %s3971_s18  ;;  %s4089_s22 = sadd.s32 4294967295, %s3983_s21   ;;  %s3983_s21 = sphi %s4074_s21, %s5756_s21   ;;  %s3979_s20 = sphi %s4072_s20, %s5758_s20   ;;  %s3975_s19 = sphi %s4070_s19, %s5760_s19   ;;  %s3971_s18 = sphi %s4068_s18, %s5759_s18  }
   0x4   : > { %5746 = sst [smem:[#allocation6_spill]] %s3979_s20  ;;  %s3224_s23 = sadd.s32 4294967294, %s3983_s21  }
   0x5   : > { %5747 = sst [smem:[#allocation7_spill]] %s3983_s21  ;;  %s4093_s24 = sadd.s32 1, %s3983_s21  }
   0x6   : > { %5748 = sst [smem:[#allocation8_spill]] %s4093_s24  ;;  %s355_s25 = sadd.s32 1, %s3979_s20 }
   0x7   : > { %s352_s26 = ssub.s32 %s3983_s21, %s4093_s24  ;;  %p365_p0 = scmp.ne.s32.totalorder %s3979_s20, %s3975_s19 }
   0x8   : > { %p353_p1 = scmp.eq.s32.totalorder %s352_s26, 0  ;;  %p366_p2 = scmp.eq.s32.totalorder %s4089_s22, 1 }
   0x9   : > { %p371_p3 = scmp.ne.s32.totalorder %s3975_s19, %s3971_s18  ;;  %p372_p4 = scmp.eq.s32.totalorder %s3224_s23, 1 }
   0xa   : > { %s4104_s27 = scalar_select %p353_p1, %s3979_s20, %s355_s25  }
   0xb   : > { %p4106_p5 = por %p366_p2, %p365_p0  ;;  %p4110_p6 = por %p372_p4, %p371_p3 }
   0xc   : > { %5749 = sst [smem:[#allocation9_spill]] %s4104_s27  ;;  %p3227_p7 = scmp.ge.s32.totalorder %s3983_s21, 1 }
   0xd   : > { %s5751_s29 = scalar_select %p4110_p6, 1, 0 }
   0xe   : > { %p440_p8 = scmp.lt.s32.totalorder %s3983_s21, 3 }
   0xf   : > { %5752 = sst [smem:[#allocation10_spill]] %s5751_s29 }
  0x10   : > { %p441_p9 = pnand %p3227_p7, %p440_p8 }
  0x11   : > { %p487_p10 = scmp.lt.s32.totalorder (!%p441_p9), %s4089_s22, 1  ;;  %s3568_s26 = sshll.u32 (!%p441_p9), %s4089_s22, 4 }
  0x12   : > { %444 = sbr.rel (%p441_p9) target bundleno = 2023 (0x7e7), region = 80  ;;  %s5688_s30 = scalar_lea.hbm (!%p441_p9), %s5738_s15, %s3568_s26 }
  0x17   : > { %v3253_v0 = vld [vmem:[%s5724_s1 + $0x178] sm:$0xff]  ;;  %v3252_v2 = vld [vmem:[%s5724_s1 + $0x170] sm:$0xff]  ;;  %v3251_v4 = vld [vmem:[%s5724_s1 + $0x168] sm:$0xff]  ;;  %s4174_s20 = scalar_select %p487_p10, %s4089_s22, 1  ;;  %vm549_vm0 = vcmask 1046528   ;;  %vm557_vm1 = vcmask 785408  }
  0x18   : > { %v519_v1 = vld [vmem:[%s5724_s1 + $0xb8] sm:$0xff]  ;;  %574 = vmatprep.subr.mxu0 %v3253_v0  ;;  %v518_v3 = vld [vmem:[%s5724_s1 + $0xb0] sm:$0xff]  ;;  %v517_v5 = vld [vmem:[%s5724_s1 + $0xa8] sm:$0xff]  ;;  %v3985_v53 = vmov 0.0   ;;  %vm777_vm2 = vcmask 1045504   ;;  %vm915_vm3 = vcmask 1044480  }
  0x19   : > { %671 = vmatprep.subr.mxu1 %v519_v1  ;;  %575 = vmatpush1.msra.mxu0 %v3252_v2  ;;  %v3250_v6 = vld [vmem:[%s5724_s1 + $0x160] sm:$0xff]  ;;  %v3249_v8 = vld [vmem:[%s5724_s1 + $0x158] sm:$0xff]  ;;  %v3248_v10 = vld [vmem:[%s5724_s1 + $0x150] sm:$0xff]  ;;  %s3571_s23 = sshll.u32 %s4174_s20, 5  ;;  %vm1053_vm4 = vcmask 1043456   ;;  %vm1215_vm5 = vcmask 326656  }
  0x1a   : > { %672 = vmatpush1.msra.mxu1 %v518_v3  ;;  %v516_v7 = vld [vmem:[%s5724_s1 + $0xa0] sm:$0xff]  ;;  %576 = vmatprep.subr.mxu0 %v3251_v4  ;;  %v515_v9 = vld [vmem:[%s5724_s1 + $0x98] sm:$0xff]  ;;  %v514_v11 = vld [vmem:[%s5724_s1 + $0x90] sm:$0xff]  ;;  %s4222_s21 = scalar_lea.vmem %s5723_s0, %s3571_s23  ;;  %vm1426_vm6 = vcmask 228352   ;;  %vm1647_vm7 = vcmask 687104   ;;  %vm2213_vm8 = vcmask 261120  }
  0x1b   : > { %673 = vmatprep.subr.mxu1 %v517_v5  ;;  %577 = vmatpush1.msra.mxu0 %v3250_v6  ;;  %v3247_v12 = vld [vmem:[%s5724_s1 + $0x148] sm:$0xff]  ;;  %v3246_v14 = vld [vmem:[%s5724_s1 + $0x140] sm:$0xff]  ;;  %v3245_v16 = vld [vmem:[%s5724_s1 + $0x138] sm:$0xff]  ;;  %vm3986_vm9 = vmmov 0   ;;  %vm2398_vm10 = vcmask 1041408   ;;  %vm2394_vm11 = vcmask 80896  }
  0x1c   : > { %674 = vmatpush1.msra.mxu1 %v516_v7  ;;  %v513_v13 = vld [vmem:[%s5724_s1 + $0x88] sm:$0xff]  ;;  %578 = vmatprep.subr.mxu0 %v3249_v8  ;;  %v512_v15 = vld [vmem:[%s5724_s1 + $0x80] sm:$0xff]  ;;  %v511_v17 = vld [vmem:[%s5724_s1 + $0x78] sm:$0xff]  ;;  %vm2559_vm12 = vcmask 654336   ;;  %vm2991_vm13 = vcmask 982016   ;;  %s485_s23 = sand.u32 1, %s3975_s19  }
  0x1d   : > { %675 = vmatprep.subr.mxu1 %v515_v9  ;;  %579 = vmatpush1.msra.mxu0 %v3248_v10  ;;  %v3244_v18 = vld [vmem:[%s5724_s1 + $0x130] sm:$0xff]  ;;  %v3243_v20 = vld [vmem:[%s5724_s1 + $0x128] sm:$0xff]  ;;  %v3242_v22 = vld [vmem:[%s5724_s1 + $0x120] sm:$0xff]  ;;  %vm3154_vm14 = vcmask 73728   ;;  %s3157_s16 = scalar_lea.sflag [#allocation3], %s485_s23  ;;  %s3987_s22 = smov [#allocation2]  }
  0x1e   : > { %676 = vmatpush1.msra.mxu1 %v514_v11  ;;  %580 = vmatprep.subr.mxu0 %v3247_v12  ;;  %v510_v19 = vld [vmem:[%s5724_s1 + $0x70] sm:$0xff]  ;;  %v509_v21 = vld [vmem:[%s5724_s1 + $0x68] sm:$0xff]  ;;  %v508_v23 = vld [vmem:[%s5724_s1 + $0x60] sm:$0xff]  ;;  %s3927_s17 = sshll.u32 %s3987_s22, 4  ;;  %s3928_s17 = int_to_ptr.vmem [resolvable:$false] %s3927_s17 }
  0x1f   : > { %677 = vmatprep.subr.mxu1 %v513_v13  ;;  %581 = vmatpush1.msra.mxu0 %v3246_v14  ;;  %v3241_v24 = vld [vmem:[%s5724_s1 + $0x118] sm:$0xff]  ;;  %v3240_v26 = vld [vmem:[%s5724_s1 + $0x110] sm:$0xff]  ;;  %v3239_v28 = vld [vmem:[%s5724_s1 + $0x108] sm:$0xff]  ;;  %s3929_s25 = scalar_lea.vmem %s3928_s17, 32 }
  0x20   : > { %678 = vmatpush1.msra.mxu1 %v512_v15  ;;  %582 = vmatprep.subr.mxu0 %v3245_v16  ;;  %v507_v25 = vld [vmem:[%s5724_s1 + $0x58] sm:$0xff]  ;;  %v506_v27 = vld [vmem:[%s5724_s1 + $0x50] sm:$0xff]  ;;  %v505_v29 = vld [vmem:[%s5724_s1 + $0x48] sm:$0xff] }
  0x21   : > { %679 = vmatprep.subr.mxu1 %v511_v17  ;;  %583 = vmatpush1.msra.mxu0 %v3244_v18  ;;  %v3238_v30 = vld [vmem:[%s5724_s1 + $0x100] sm:$0xff]  ;;  %v3237_v32 = vld [vmem:[%s5724_s1 + $0xf8] sm:$0xff]  ;;  %v3236_v34 = vld [vmem:[%s5724_s1 + $0xf0] sm:$0xff] }
  0x22   : > { %680 = vmatpush1.msra.mxu1 %v510_v19  ;;  %584 = vmatprep.subr.mxu0 %v3243_v20  ;;  %v504_v31 = vld [vmem:[%s5724_s1 + $0x40] sm:$0xff]  ;;  %v503_v33 = vld [vmem:[%s5724_s1 + $0x38] sm:$0xff]  ;;  %v502_v35 = vld [vmem:[%s5724_s1 + $0x30] sm:$0xff] }
  0x23   : > { %681 = vmatprep.subr.mxu1 %v509_v21  ;;  %585 = vmatpush1.msra.mxu0 %v3242_v22  ;;  %v3235_v36 = vld [vmem:[%s5724_s1 + $0xe8] sm:$0xff]  ;;  %v4243_v38 = vld [vmem:[%s4222_s21] sm:$0xff]  ;;  %v3233_v42 = vld [vmem:[%s5724_s1 + $0xd8] sm:$0xff] }
  0x24   : > { %682 = vmatpush1.msra.mxu1 %v508_v23  ;;  %586 = vmatprep.subr.mxu0 %v3241_v24  ;;  %v501_v37 = vld [vmem:[%s5724_s1 + $0x28] sm:$0xff]  ;;  %v3234_v40 = vld [vmem:[%s5724_s1 + $0xe0] sm:$0xff]  ;;  %v499_v43 = vld [vmem:[%s5724_s1 + $0x18] sm:$0xff]  ;;  %v550_v46 = vrot.slane %v4243_v38, 1 }
  0x25   : > { %683 = vmatprep.subr.mxu1 %v507_v25  ;;  %587 = vmatpush1.msra.mxu0 %v3240_v26  ;;  %v4246_v39 = vld [vmem:[%s4222_s21 + $0x8] sm:$0xff]  ;;  %v500_v41 = vld [vmem:[%s5724_s1 + $0x20] sm:$0xff]  ;;  %v3232_v44 = vld [vmem:[%s5724_s1 + $0xd0] sm:$0xff] }
  0x26   : > { %684 = vmatpush1.msra.mxu1 %v506_v27  ;;  %588 = vmatprep.subr.mxu0 %v3239_v28  ;;  %v498_v45 = vld [vmem:[%s5724_s1 + $0x10] sm:$0xff]  ;;  %v551_v47 = vrot.slane %v4246_v39, 1  ;;  %v3231_v48 = vld [vmem:[%s5724_s1 + $0xc8] sm:$0xff]  ;;  %v3230_v50 = vld [vmem:[%s5724_s1 + $0xc0] sm:$0xff] }
  0x27   : > { %685 = vmatprep.subr.mxu1 %v505_v29  ;;  %589 = vmatpush1.msra.mxu0 %v3238_v30  ;;  %v497_v49 = vld [vmem:[%s5724_s1 + $0x8] sm:$0xff]  ;;  %v496_v51 = vld [vmem:[%s5724_s1] sm:$0xff]  ;;  %v3285_v54 = vld [vmem:[%s5724_s1 + $0x238] sm:$0xff] }
  0x28   : > { %686 = vmatpush1.msra.mxu1 %v504_v31  ;;  %590 = vmatprep.subr.mxu0 %v3237_v32  ;;  %v552_v52 = vsel %vm549_vm0, %v550_v46, %v551_v47  ;;  %v3313_v55 = vld [vmem:[%s5724_s1 + $0x2f8] sm:$0xff]  ;;  %v3284_v56 = vld [vmem:[%s5724_s1 + $0x230] sm:$0xff]  ;;  %v3283_v58 = vld [vmem:[%s5724_s1 + $0x228] sm:$0xff]  ;;  %v917_v46 = vrot.slane %v4246_v39, 3 }
  0x29   : > { %687 = vmatprep.subr.mxu1 %v503_v33  ;;  %591 = vmatpush1.msra.mxu0 %v3236_v34  ;;  %v3312_v57 = vld [vmem:[%s5724_s1 + $0x2f0] sm:$0xff]  ;;  %v3311_v59 = vld [vmem:[%s5724_s1 + $0x2e8] sm:$0xff]  ;;  %v3282_v60 = vld [vmem:[%s5724_s1 + $0x220] sm:$0xff] }
  0x2a   : > { %688 = vmatpush1.msra.mxu1 %v502_v35  ;;  %592 = vmatprep.subr.mxu0 %v3235_v36  ;;  %v3310_v61 = vld [vmem:[%s5724_s1 + $0x2e0] sm:$0xff]  ;;  %v3281_v62 = vld [vmem:[%s5724_s1 + $0x218] sm:$0xff]  ;;  %v4319_v0 = vld [vmem:[%s4222_s21 + $0x10] sm:$0xff]  ;;  %v778_v36 = vrot.slane %v4243_v38, 2 }
  0x2b   : > { %689 = vmatprep.subr.mxu1 %v501_v37  ;;  %593 = vmatpush1.msra.mxu0 %v3234_v40  ;;  %v3309_v63 = vld [vmem:[%s5724_s1 + $0x2d8] sm:$0xff]  ;;  %v3280_v1 = vld [vmem:[%s5724_s1 + $0x210] sm:$0xff]  ;;  %v3279_v3 = vld [vmem:[%s5724_s1 + $0x208] sm:$0xff]  ;;  %v553_v7 = vrot.slane %v4319_v0, 1  ;;  %v779_v37 = vrot.slane %v4246_v39, 2 }
  0x2c   : > { %690 = vmatpush1.msra.mxu1 %v500_v41  ;;  %594 = vmatprep.subr.mxu0 %v3233_v42  ;;  %v3308_v2 = vld [vmem:[%s5724_s1 + $0x2d0] sm:$0xff]  ;;  %v3307_v4 = vld [vmem:[%s5724_s1 + $0x2c8] sm:$0xff]  ;;  %v3278_v5 = vld [vmem:[%s5724_s1 + $0x200] sm:$0xff] }
  0x2d   : > { %691 = vmatprep.subr.mxu1 %v499_v43  ;;  %595 = vmatpush1.msra.mxu0 %v3232_v44  ;;  %v3306_v6 = vld [vmem:[%s5724_s1 + $0x2c0] sm:$0xff]  ;;  %v3277_v8 = vld [vmem:[%s5724_s1 + $0x1f8] sm:$0xff]  ;;  %v3276_v9 = vld [vmem:[%s5724_s1 + $0x1f0] sm:$0xff]  ;;  %v554_v13 = vsel %vm549_vm0, %v551_v47, %v553_v7 }
  0x2e   : > { %692 = vmatpush1.msra.mxu1 %v498_v45  ;;  %596 = vmatprep.subr.mxu0 %v3231_v48  ;;  %v3275_v10 = vld [vmem:[%s5724_s1 + $0x1e8] sm:$0xff]  ;;  %v3305_v11 = vld [vmem:[%s5724_s1 + $0x2b8] sm:$0xff]  ;;  %v3274_v14 = vld [vmem:[%s5724_s1 + $0x1e0] sm:$0xff]  ;;  %v916_v45 = vrot.slane %v4243_v38, 3  ;;  %v780_v48 = vsel %vm777_vm2, %v778_v36, %v779_v37 }
  0x2f   : > { %693 = vmatprep.subr.mxu1 %v497_v49  ;;  %597 = vmatpush1.msra.mxu0 %v3230_v50  ;;  %v4353_v12 = vld [vmem:[%s4222_s21 + $0x18] sm:$0xff]  ;;  %v3304_v15 = vld [vmem:[%s5724_s1 + $0x2b0] sm:$0xff]  ;;  %v3303_v17 = vld [vmem:[%s5724_s1 + $0x2a8] sm:$0xff]  ;;  %s486_s21 = scalar_lea.vmem [#allocation2], %s485_s23 }
  0x30   : > { %630 = vmatprep.mubr.f32.mxu0 %v3985_v53  ;;  %694 = vmatpush1.msra.mxu1 %v496_v51  ;;  %v3273_v16 = vld [vmem:[%s5724_s1 + $0x1d8] sm:$0xff]  ;;  %v555_v18 = vrot.slane %v4353_v12, 1  ;;  %v3272_v19 = vld [vmem:[%s5724_s1 + $0x1d0] sm:$0xff]  ;;  %v3302_v20 = vld [vmem:[%s5724_s1 + $0x2a0] sm:$0xff]  ;;  %s3169_s27 = sshll.u32 %s486_s21, 4  ;;  %s3170_s27 = int_to_ptr.vmem [resolvable:$true] %s3169_s27 }
  0x31   : > { %727 = vmatprep.mubr.f32.mxu1 %v3985_v53  ;;  %3254 = vmatmul.mubr.msk.f32.vlgmr.msra.gmra.mxu0 %vm557_vm1, %v552_v52  ;;  %v3271_v21 = vld [vmem:[%s5724_s1 + $0x1c8] sm:$0xff]  ;;  %v3301_v22 = vld [vmem:[%s5724_s1 + $0x298] sm:$0xff]  ;;  %v3270_v24 = vld [vmem:[%s5724_s1 + $0x1c0] sm:$0xff]  ;;  %v781_v52 = vrot.slane %v4319_v0, 2  ;;  %s3923_s20 = scalar_lea.vmem %s3170_s27, 16  ;;  %p3930_p0 = scmp.lt.s32.totalorder %s3170_s27, %s3928_s17 }
  0x32   : > { %3258 = vmatmul.mubr.msk.f32.vlgmr.msra.gmra.mxu1 %vm557_vm1, %v4243_v38  ;;  %801 = vmatprep.subr.mxu0 %v3285_v54  ;;  %v556_v23 = vsel %vm549_vm0, %v553_v7, %v555_v18  ;;  %v3300_v25 = vld [vmem:[%s5724_s1 + $0x290] sm:$0xff]  ;;  %v3269_v26 = vld [vmem:[%s5724_s1 + $0x1b8] sm:$0xff]  ;;  %v3299_v27 = vld [vmem:[%s5724_s1 + $0x288] sm:$0xff]  ;;  %p3924_p11 = scmp.ne.s32.totalorder %s3170_s27, %s3923_s20  ;;  %p3931_p1 = scmp.lt.s32.totalorder %s3929_s25, %s3923_s20 }
  0x33   : > { %939 = vmatprep.subr.mxu1 %v3313_v55  ;;  %802 = vmatpush1.msra.mxu0 %v3284_v56  ;;  %v3268_v28 = vld [vmem:[%s5724_s1 + $0x1b0] sm:$0xff]  ;;  %v3298_v29 = vld [vmem:[%s5724_s1 + $0x280] sm:$0xff]  ;;  %v3267_v30 = vld [vmem:[%s5724_s1 + $0x1a8] sm:$0xff]  ;;  %v918_v55 = vsel %vm915_vm3, %v916_v45, %v917_v46  ;;  %v919_v56 = vrot.slane %v4319_v0, 3 }
  0x34   : > { %940 = vmatpush1.msra.mxu1 %v3312_v57  ;;  %803 = vmatprep.subr.mxu0 %v3283_v58  ;;  %v3297_v31 = vld [vmem:[%s5724_s1 + $0x278] sm:$0xff]  ;;  %v3266_v32 = vld [vmem:[%s5724_s1 + $0x1a0] sm:$0xff]  ;;  %v3296_v33 = vld [vmem:[%s5724_s1 + $0x270] sm:$0xff]  ;;  %p3925_p12 = pnand %p3924_p11, %p4106_p5  ;;  %p3932_p2 = por %p3931_p1, %p3930_p0 }
  0x35   : > { %941 = vmatprep.subr.mxu1 %v3311_v59  ;;  %804 = vmatpush1.msra.mxu0 %v3282_v60  ;;  %v3265_v34 = vld [vmem:[%s5724_s1 + $0x198] sm:$0xff]  ;;  %v3295_v35 = vld [vmem:[%s5724_s1 + $0x268] sm:$0xff]  ;;  %v3264_v40 = vld [vmem:[%s5724_s1 + $0x190] sm:$0xff]  ;;  %v782_v59 = vsel %vm777_vm2, %v779_v37, %v781_v52 }
  0x36   : > { %942 = vmatpush1.msra.mxu1 %v3310_v61  ;;  %805 = vmatprep.subr.mxu0 %v3281_v62  ;;  %v3294_v41 = vld [vmem:[%s5724_s1 + $0x260] sm:$0xff]  ;;  %v3263_v42 = vld [vmem:[%s5724_s1 + $0x188] sm:$0xff]  ;;  %v3293_v43 = vld [vmem:[%s5724_s1 + $0x258] sm:$0xff]  ;;  %v783_v61 = vrot.slane %v4353_v12, 2  ;;  %p3926_p13 = pneg %p3925_p12 }
  0x37   : > { %943 = vmatprep.subr.mxu1 %v3309_v63  ;;  %806 = vmatpush1.msra.mxu0 %v3280_v1  ;;  %v3262_v44 = vld [vmem:[%s5724_s1 + $0x180] sm:$0xff]  ;;  %v3292_v47 = vld [vmem:[%s5724_s1 + $0x250] sm:$0xff]  ;;  %v3291_v49 = vld [vmem:[%s5724_s1 + $0x248] sm:$0xff]  ;;  %v920_v63 = vsel %vm915_vm3, %v917_v46, %v919_v56  ;;  %v921_v1 = vrot.slane %v4353_v12, 3 }
  0x38   : > { %944 = vmatpush1.msra.mxu1 %v3308_v2  ;;  %807 = vmatprep.subr.mxu0 %v3279_v3  ;;  %v3341_v50 = vld [vmem:[%s5724_s1 + $0x3b8] sm:$0xff]  ;;  %v3290_v51 = vld [vmem:[%s5724_s1 + $0x240] sm:$0xff]  ;;  %v3340_v54 = vld [vmem:[%s5724_s1 + $0x3b0] sm:$0xff]  ;;  %p3933_p3 = pnand %p3932_p2, %p3926_p13 }
  0x39   : > { %945 = vmatprep.subr.mxu1 %v3307_v4  ;;  %808 = vmatpush1.msra.mxu0 %v3278_v5  ;;  %v3339_v57 = vld [vmem:[%s5724_s1 + $0x3a8] sm:$0xff]  ;;  %v3338_v58 = vld [vmem:[%s5724_s1 + $0x3a0] sm:$0xff]  ;;  %v3337_v60 = vld [vmem:[%s5724_s1 + $0x398] sm:$0xff]  ;;  %v784_v4 = vsel %vm777_vm2, %v781_v52, %v783_v61  ;;  %v922_v7 = vsel %vm915_vm3, %v919_v56, %v921_v1 }
  0x3a   : > { %946 = vmatpush1.msra.mxu1 %v3306_v6  ;;  %809 = vmatprep.subr.mxu0 %v3277_v8  ;;  %v3336_v62 = vld [vmem:[%s5724_s1 + $0x390] sm:$0xff]  ;;  %v3335_v2 = vld [vmem:[%s5724_s1 + $0x388] sm:$0xff]  ;;  %v3334_v3 = vld [vmem:[%s5724_s1 + $0x380] sm:$0xff] }
  0x3b   : > { %636 = vmatprep.mubr.f32.mxu0 %v3985_v53  ;;  %810 = vmatpush1.msra.mxu0 %v3276_v9  ;;  %v3333_v5 = vld [vmem:[%s5724_s1 + $0x378] sm:$0xff]  ;;  %v3332_v6 = vld [vmem:[%s5724_s1 + $0x370] sm:$0xff]  ;;  %v3331_v8 = vld [vmem:[%s5724_s1 + $0x368] sm:$0xff] }
  0x3c   : > { %733 = vmatprep.mubr.f32.mxu1 %v3985_v53  ;;  %811 = vmatprep.subr.mxu0 %v3275_v10  ;;  %v3330_v9 = vld [vmem:[%s5724_s1 + $0x360] sm:$0xff]  ;;  %v3329_v10 = vld [vmem:[%s5724_s1 + $0x358] sm:$0xff]  ;;  %v1204_v36 = vld [vmem:[%s5727_s4 + $0x50] sm:$0xff] }
  0x3d   : > { %947 = vmatprep.subr.mxu1 %v3305_v11  ;;  %3255 = vmatmul.mubr.msk.f32.gmra.mxu0 %vm557_vm1, %v554_v13  ;;  %v3328_v11 = vld [vmem:[%s5724_s1 + $0x350] sm:$0xff]  ;;  %v3327_v13 = vld [vmem:[%s5724_s1 + $0x348] sm:$0xff]  ;;  %v3360_v37 = vld [vmem:[%s5727_s4 + $0xf8] sm:$0xff] }
  0x3e   : > { %3259 = vmatmul.mubr.msk.f32.gmra.mxu1 %vm557_vm1, %v4246_v39  ;;  %812 = vmatpush1.msra.mxu0 %v3274_v14  ;;  %v3326_v14 = vld [vmem:[%s5724_s1 + $0x340] sm:$0xff]  ;;  %v1200_v46 = vld [vmem:[%s5727_s4 + $0x30] sm:$0xff]  ;;  %v1197_v52 = vld [vmem:[%s5727_s4 + $0x18] sm:$0xff] }
  0x3f   : > { %948 = vmatpush1.msra.mxu1 %v3304_v15  ;;  %813 = vmatprep.subr.mxu0 %v3273_v16  ;;  %v3325_v15 = vld [vmem:[%s5724_s1 + $0x338] sm:$0xff]  ;;  %v3324_v16 = vld [vmem:[%s5724_s1 + $0x330] sm:$0xff]  ;;  %v3357_v45 = vld [vmem:[%s5727_s4 + $0xe0] sm:$0xff] }
  0x40   : > { %949 = vmatprep.subr.mxu1 %v3303_v17  ;;  %814 = vmatpush1.msra.mxu0 %v3272_v19  ;;  %v3323_v17 = vld [vmem:[%s5724_s1 + $0x328] sm:$0xff]  ;;  %v3321_v19 = vld [vmem:[%s5724_s1 + $0x318] sm:$0xff] }
  0x41   : > { %950 = vmatpush1.msra.mxu1 %v3302_v20  ;;  %642 = vmatprep.mubr.f32.mxu0 %v3985_v53  ;;  %v1054_v20 = vrot.slane %v4243_v38, 4  ;;  %v3352_v56 = vld [vmem:[%s5727_s4 + $0xb8] sm:$0xff] }
  0x42   : > { %739 = vmatprep.mubr.f32.mxu1 %v3985_v53  ;;  %815 = vmatprep.subr.mxu0 %v3271_v21  ;;  %v1055_v21 = vrot.slane %v4246_v39, 4  ;;  %v1057_v39 = vrot.slane %v4319_v0, 4 }
  0x43   : > { %951 = vmatprep.subr.mxu1 %v3301_v22  ;;  %3256 = vmatmul.mubr.msk.f32.gmra.mxu0 %vm557_vm1, %v556_v23  ;;  %v3320_v22 = vld [vmem:[%s5724_s1 + $0x310] sm:$0xff]  ;;  %v3319_v23 = vld [vmem:[%s5724_s1 + $0x308] sm:$0xff] }
  0x44   : > { %3260 = vmatmul.mubr.msk.f32.gmra.mxu1 %vm557_vm1, %v4319_v0  ;;  %816 = vmatpush1.msra.mxu0 %v3270_v24  ;;  %v3318_v24 = vld [vmem:[%s5724_s1 + $0x300] sm:$0xff]  ;;  %v1056_v38 = vsel %vm1053_vm4, %v1054_v20, %v1055_v21  ;;  %v1209_v0 = vld [vmem:[%s5727_s4 + $0x78] sm:$0xff] }
  0x45   : > { %952 = vmatpush1.msra.mxu1 %v3300_v25  ;;  %817 = vmatprep.subr.mxu0 %v3269_v26  ;;  %v1058_v25 = vsel %vm1053_vm4, %v1055_v21, %v1057_v39  ;;  %v1059_v26 = vrot.slane %v4353_v12, 4 }
  0x46   : > { %953 = vmatprep.subr.mxu1 %v3299_v27  ;;  %818 = vmatpush1.msra.mxu0 %v3268_v28  ;;  %v1208_v28 = vld [vmem:[%s5727_s4 + $0x70] sm:$0xff] }
  0x47   : > { %954 = vmatpush1.msra.mxu1 %v3298_v29  ;;  %648 = vmatprep.mubr.f32.mxu0 %v3985_v53  ;;  %v1060_v27 = vsel %vm1053_vm4, %v1057_v39, %v1059_v26  ;;  %v3364_v29 = vld [vmem:[%s5727_s4 + $0x118] sm:$0xff] }
  0x48   : > { %745 = vmatprep.mubr.f32.mxu1 %v3985_v53  ;;  %819 = vmatprep.subr.mxu0 %v3267_v30  ;;  %v1207_v30 = vld [vmem:[%s5727_s4 + $0x68] sm:$0xff] }
  0x49   : > { %955 = vmatprep.subr.mxu1 %v3297_v31  ;;  %3257 = vmatmul.mubr.msk.f32.gmra.mxu0 %vm557_vm1, %v555_v18  ;;  %v3322_v18 = vld [vmem:[%s5724_s1 + $0x320] sm:$0xff]  ;;  %v3363_v31 = vld [vmem:[%s5727_s4 + $0x110] sm:$0xff] }
  0x4a   : > { %3261 = vmatmul.mubr.msk.f32.gmra.mxu1 %vm557_vm1, %v4353_v12  ;;  %820 = vmatpush1.msra.mxu0 %v3266_v32  ;;  %v3365_v12 = vld [vmem:[%s5727_s4 + $0x120] sm:$0xff] }
  0x4b   : > { %956 = vmatpush1.msra.mxu1 %v3296_v33  ;;  %821 = vmatprep.subr.mxu0 %v3265_v34  ;;  %v1206_v32 = vld [vmem:[%s5727_s4 + $0x60] sm:$0xff]  ;;  %v3362_v33 = vld [vmem:[%s5727_s4 + $0x108] sm:$0xff]  ;;  %v1205_v34 = vld [vmem:[%s5727_s4 + $0x58] sm:$0xff] }
  0x4c   : > { %957 = vmatprep.subr.mxu1 %v3295_v35  ;;  %822 = vmatpush1.msra.mxu0 %v3264_v40  ;;  %v3361_v35 = vld [vmem:[%s5727_s4 + $0x100] sm:$0xff]  ;;  %v1203_v40 = vld [vmem:[%s5727_s4 + $0x48] sm:$0xff] }
  0x4d   : > { %958 = vmatpush1.msra.mxu1 %v3294_v41  ;;  %823 = vmatprep.subr.mxu0 %v3263_v42  ;;  %v3359_v41 = vld [vmem:[%s5727_s4 + $0xf0] sm:$0xff]  ;;  %v1202_v42 = vld [vmem:[%s5727_s4 + $0x40] sm:$0xff] }
  0x4e   : > { %959 = vmatprep.subr.mxu1 %v3293_v43  ;;  %824 = vmatpush1.msra.mxu0 %v3262_v44  ;;  %v3358_v43 = vld [vmem:[%s5727_s4 + $0xe8] sm:$0xff]  ;;  %v1201_v44 = vld [vmem:[%s5727_s4 + $0x38] sm:$0xff] }
  0x4f   : > { %857 = vmatprep.mubr.f32.mxu0 %v3985_v53  ;;  %960 = vmatpush1.msra.mxu1 %v3292_v47  ;;  %v3356_v47 = vld [vmem:[%s5727_s4 + $0xd8] sm:$0xff] }
  0x50   : > { %3286 = vmatmul.mubr.msk.f32.vlgmr.msra.gmra.mxu0 %vm557_vm1, %v780_v48  ;;  %961 = vmatprep.subr.mxu1 %v3291_v49  ;;  %v1199_v48 = vld [vmem:[%s5727_s4 + $0x28] sm:$0xff]  ;;  %v3355_v49 = vld [vmem:[%s5727_s4 + $0xd0] sm:$0xff] }
  0x51   : > { %1077 = vmatprep.subr.mxu0 %v3341_v50  ;;  %962 = vmatpush1.msra.mxu1 %v3290_v51  ;;  %v1198_v50 = vld [vmem:[%s5727_s4 + $0x20] sm:$0xff]  ;;  %v3354_v51 = vld [vmem:[%s5727_s4 + $0xc8] sm:$0xff] }
  0x52   : > { %995 = vmatprep.mubr.f32.mxu1 %v3985_v53  ;;  %1078 = vmatpush1.msra.mxu0 %v3340_v54  ;;  %v3353_v54 = vld [vmem:[%s5727_s4 + $0xc0] sm:$0xff] }
  0x53   : > { %3314 = vmatmul.mubr.msk.f32.vlgmr.msra.gmra.mxu1 %vm557_vm1, %v918_v55  ;;  %1079 = vmatprep.subr.mxu0 %v3339_v57  ;;  %v1196_v55 = vld [vmem:[%s5727_s4 + $0x10] sm:$0xff]  ;;  %v1195_v57 = vld [vmem:[%s5727_s4 + $0x8] sm:$0xff] }
  0x54   : > { %863 = vmatprep.mubr.f32.mxu0 %v3985_v53  ;;  %1080 = vmatpush1.msra.mxu0 %v3338_v58  ;;  %v3351_v58 = vld [vmem:[%s5727_s4 + $0xb0] sm:$0xff] }
  0x55   : > { %1001 = vmatprep.mubr.f32.mxu1 %v3985_v53  ;;  %3287 = vmatmul.mubr.msk.f32.gmra.mxu0 %vm557_vm1, %v782_v59  ;;  %v1194_v59 = vld [vmem:[%s5727_s4] sm:$0xff] }
  0x56   : > { %1081 = vmatprep.subr.mxu0 %v3337_v60  ;;  %869 = vmatprep.mubr.f32.mxu0 %v3985_v53  ;;  %v3350_v60 = vld [vmem:[%s5727_s4 + $0xa8] sm:$0xff] }
  0x57   : > { %1082 = vmatpush1.msra.mxu0 %v3336_v62  ;;  %3315 = vmatmul.mubr.msk.f32.gmra.mxu1 %vm557_vm1, %v920_v63  ;;  %v3370_v62 = vld [vmem:[%s5727_s4 + $0x148] sm:$0xff]  ;;  %v1213_v63 = vld [vmem:[%s5727_s4 + $0x98] sm:$0xff] }
  0x58   : > { %1083 = vmatprep.subr.mxu0 %v3335_v2  ;;  %1007 = vmatprep.mubr.f32.mxu1 %v3985_v53  ;;  %v1212_v2 = vld [vmem:[%s5727_s4 + $0x90] sm:$0xff] }
  0x59   : > { %1084 = vmatpush1.msra.mxu0 %v3334_v3  ;;  %1228 = vmatprep.subr.mxu1 %v3985_v53  ;;  %v3368_v3 = vld [vmem:[%s5727_s4 + $0x138] sm:$0xff] }
  0x5a   : > { %3288 = vmatmul.mubr.msk.f32.gmra.mxu0 %vm557_vm1, %v784_v4  ;;  %1085 = vmatprep.subr.mxu0 %v3333_v5  ;;  %v1211_v4 = vld [vmem:[%s5727_s4 + $0x88] sm:$0xff]  ;;  %v3367_v5 = vld [vmem:[%s5727_s4 + $0x130] sm:$0xff] }
  0x5b   : > { %1086 = vmatpush1.msra.mxu0 %v3332_v6  ;;  %3316 = vmatmul.mubr.msk.f32.gmra.mxu1 %vm557_vm1, %v922_v7  ;;  %v1210_v6 = vld [vmem:[%s5727_s4 + $0x80] sm:$0xff]  ;;  %v3366_v7 = vld [vmem:[%s5727_s4 + $0x128] sm:$0xff] }
  0x5c   : > { %1087 = vmatprep.subr.mxu0 %v3331_v8  ;;  %875 = vmatprep.mubr.f32.mxu0 %v3985_v53 }
  0x5d   : > { %1088 = vmatpush1.msra.mxu0 %v3330_v9  ;;  %1013 = vmatprep.mubr.f32.mxu1 %v3985_v53 }
  0x5e   : > { %3289 = vmatmul.mubr.msk.f32.gmra.mxu0 %vm557_vm1, %v783_v61  ;;  %1089 = vmatprep.subr.mxu0 %v3329_v10  ;;  %v1214_v61 = vld [vmem:[%s5727_s4 + $0xa0] sm:$0xff] }
  0x5f   : > { %1090 = vmatpush1.msra.mxu0 %v3328_v11  ;;  %3317 = vmatmul.mubr.msk.f32.gmra.mxu1 %vm557_vm1, %v921_v1  ;;  %v3369_v1 = vld [vmem:[%s5727_s4 + $0x140] sm:$0xff] }
  0x60   : > { %1091 = vmatprep.subr.mxu0 %v3327_v13  ;;  %1133 = vmatprep.mubr.f32.mxu0 %v3985_v53 }
  0x61   : > { %1092 = vmatpush1.msra.mxu0 %v3326_v14  ;;  %1229 = vmatpush1.msra.mxu1 %v1209_v0 }
  0x62   : > { %1093 = vmatprep.subr.mxu0 %v3325_v15  ;;  %1230 = vmatprep.subr.mxu1 %v3985_v53 }
  0x63   : > { %1094 = vmatpush1.msra.mxu0 %v3324_v16  ;;  %1231 = vmatpush1.msra.mxu1 %v1208_v28  ;;  %v1168_v28 = vlaneseq }
  0x64   : > { %1095 = vmatprep.subr.mxu0 %v3323_v17  ;;  %1232 = vmatprep.subr.mxu1 %v3985_v53 }
  0x65   : > { %1096 = vmatpush1.msra.mxu0 %v3322_v18  ;;  %1233 = vmatpush1.msra.mxu1 %v1207_v30 }
  0x66   : > { %1097 = vmatprep.subr.mxu0 %v3321_v19  ;;  %1234 = vmatprep.subr.mxu1 %v3985_v53 }
  0x67   : > { %1098 = vmatpush1.msra.mxu0 %v3320_v22  ;;  %1235 = vmatpush1.msra.mxu1 %v1206_v32 }
  0x68   : > { %1099 = vmatprep.subr.mxu0 %v3319_v23  ;;  %1236 = vmatprep.subr.mxu1 %v3985_v53 }
  0x69   : > { %1100 = vmatpush1.msra.mxu0 %v3318_v24  ;;  %1237 = vmatpush1.msra.mxu1 %v1205_v34 }
  0x6a   : > { %3342 = vmatmul.mubr.msk.f32.vlgmr.msra.gmra.mxu0 %vm557_vm1, %v1056_v38  ;;  %1335 = vmatprep.subr.mxu0 %v3985_v53 }
  0x6b   : > { %1139 = vmatprep.mubr.f32.mxu0 %v3985_v53  ;;  %1336 = vmatpush1.msra.mxu0 %v3365_v12 }
  0x6c   : > { %1337 = vmatprep.subr.mxu0 %v3985_v53  ;;  %1238 = vmatprep.subr.mxu1 %v3985_v53 }
  0x6d   : > { %1338 = vmatpush1.msra.mxu0 %v3364_v29  ;;  %1239 = vmatpush1.msra.mxu1 %v1204_v36 }
  0x6e   : > { %3343 = vmatmul.mubr.msk.f32.gmra.mxu0 %vm557_vm1, %v1058_v25  ;;  %1339 = vmatprep.subr.mxu0 %v3985_v53 }
  0x6f   : > { %1145 = vmatprep.mubr.f32.mxu0 %v3985_v53  ;;  %1340 = vmatpush1.msra.mxu0 %v3363_v31  ;;  %v4744_v31 = vshrl.u32 %v1168_v28, 7 }
  0x70   : > { %1341 = vmatprep.subr.mxu0 %v3985_v53  ;;  %1240 = vmatprep.subr.mxu1 %v3985_v53 }
  0x71   : > { %1342 = vmatpush1.msra.mxu0 %v3362_v33  ;;  %1241 = vmatpush1.msra.mxu1 %v1203_v40  ;;  %v1174_v40 = vsub.s32 1, %v4744_v31 }
  0x72   : > { %3344 = vmatmul.mubr.msk.f32.gmra.mxu0 %vm557_vm1, %v1060_v27  ;;  %1343 = vmatprep.subr.mxu0 %v3985_v53 }
  0x73   : > { %1151 = vmatprep.mubr.f32.mxu0 %v3985_v53  ;;  %1344 = vmatpush1.msra.mxu0 %v3361_v35 }
  0x74   : > { %1345 = vmatprep.subr.mxu0 %v3985_v53  ;;  %1242 = vmatprep.subr.mxu1 %v3985_v53 }
  0x75   : > { %1346 = vmatpush1.msra.mxu0 %v3360_v37  ;;  %1243 = vmatpush1.msra.mxu1 %v1202_v42  ;;  %v1170_v37 = vsub.s32 0, %v4744_v31 }
  0x76   : > { %3345 = vmatmul.mubr.msk.f32.gmra.mxu0 %vm557_vm1, %v1059_v26  ;;  %1347 = vmatprep.subr.mxu0 %v3985_v53 }
  0x77   : > { %1348 = vmatpush1.msra.mxu0 %v3359_v41  ;;  %1244 = vmatprep.subr.mxu1 %v3985_v53 }
  0x78   : > { %1349 = vmatprep.subr.mxu0 %v3985_v53  ;;  %1245 = vmatpush1.msra.mxu1 %v1201_v44 }
  0x79   : > { %1350 = vmatpush1.msra.mxu0 %v3358_v43  ;;  %1246 = vmatprep.subr.mxu1 %v3985_v53  ;;  %v1166_v43 = vld [vmem:[%s5725_s2] sm:$0x3] }
  0x7a   : > { %1351 = vmatprep.subr.mxu0 %v3985_v53  ;;  %1247 = vmatpush1.msra.mxu1 %v1200_v46 }
  0x7b   : > { %1352 = vmatpush1.msra.mxu0 %v3357_v45  ;;  %1248 = vmatprep.subr.mxu1 %v3985_v53 }
  0x7c   : > { %1353 = vmatprep.subr.mxu0 %v3985_v53  ;;  %1249 = vmatpush1.msra.mxu1 %v1199_v48 }
  0x7d   : > { %1354 = vmatpush1.msra.mxu0 %v3356_v47  ;;  %1250 = vmatprep.subr.mxu1 %v3985_v53 }
  0x7e   : > { %1355 = vmatprep.subr.mxu0 %v3985_v53  ;;  %1251 = vmatpush1.msra.mxu1 %v1198_v50  ;;  %v1171_v50 = vrot.slane %v1166_v43, %v1170_v37 }
  0x7f   : > { %1356 = vmatpush1.msra.mxu0 %v3355_v49  ;;  %1252 = vmatprep.subr.mxu1 %v3985_v53 }
  0x80   : > { %1357 = vmatprep.subr.mxu0 %v3985_v53  ;;  %1253 = vmatpush1.msra.mxu1 %v1197_v52 }
  0x81   : > { %1358 = vmatpush1.msra.mxu0 %v3354_v51  ;;  %1254 = vmatprep.subr.mxu1 %v3985_v53  ;;  %v1175_v51 = vrot.slane %v1166_v43, %v1174_v40  ;;  %v3404_v43 = vld [vmem:[%s5728_s5 + $0x158] sm:$0xf] }
  0x82   : > { %1359 = vmatprep.subr.mxu0 %v3985_v53  ;;  %1255 = vmatpush1.msra.mxu1 %v1196_v55 }
  0x83   : > { %1360 = vmatpush1.msra.mxu0 %v3353_v54  ;;  %1256 = vmatprep.subr.mxu1 %v3985_v53 }
  0x84   : > { %1361 = vmatprep.subr.mxu0 %v3985_v53  ;;  %1257 = vmatpush1.msra.mxu1 %v1195_v57 }
  0x85   : > { %1362 = vmatpush1.msra.mxu0 %v3352_v56  ;;  %1258 = vmatprep.subr.mxu1 %v3985_v53 }
  0x86   : > { %1363 = vmatprep.subr.mxu0 %v3985_v53  ;;  %1259 = vmatpush1.msra.mxu1 %v1194_v59 }
  0x87   : > { %1364 = vmatpush1.msra.mxu0 %v3351_v58  ;;  %1282 = vmatprep.subr.mxu1 %v3985_v53 }
  0x88   : > { %1365 = vmatprep.subr.mxu0 %v3985_v53  ;;  %1283 = vmatpush2.msra.mxu1 %v1214_v61 }
  0x89   : > { %1366 = vmatpush1.msra.mxu0 %v3350_v60  ;;  %1284 = vmatprep.subr.mxu1 %v3985_v53 }
  0x8a   : > { %1389 = vmatprep.subr.mxu0 %v3985_v53  ;;  %1285 = vmatpush2.msra.mxu1 %v1213_v63 }
  0x8b   : > { %1390 = vmatpush2.msra.mxu0 %v3370_v62  ;;  %1286 = vmatprep.subr.mxu1 %v3985_v53 }
  0x8c   : > { %1391 = vmatprep.subr.mxu0 %v3985_v53  ;;  %1287 = vmatpush2.msra.mxu1 %v1212_v2 }
  0x8d   : > { %1392 = vmatpush2.msra.mxu0 %v3369_v1  ;;  %1288 = vmatprep.subr.mxu1 %v3985_v53 }
  0x8e   : > { %1393 = vmatprep.subr.mxu0 %v3985_v53  ;;  %1289 = vmatpush2.msra.mxu1 %v1211_v4 }
  0x8f   : > { %1394 = vmatpush2.msra.mxu0 %v3368_v3  ;;  %1290 = vmatprep.subr.mxu1 %v3985_v53 }
  0x90   : > { %1395 = vmatprep.subr.mxu0 %v3985_v53  ;;  %1291 = vmatpush2.msra.mxu1 %v1210_v6 }
  0x91   : > { %1396 = vmatpush2.msra.mxu0 %v3367_v5 }
  0x92   : > { %1397 = vmatprep.subr.mxu0 %v3985_v53 }
  0x93   : > { %1398 = vmatpush2.msra.mxu0 %v3366_v7 }
  0x94   : > { %3405 = vmatprep.subr.msk.mxu0 %vm1053_vm4, %v3404_v43  ;;  %v3387_v43 = vld [vmem:[%s5728_s5 + $0xd0] sm:$0xff] }
  0xf1   : > { %v632_v8 = vpop.f32.mrf.mxu0 }
  0xf2   : > { %v729_v9 = vpop.f32.mrf.mxu1 }
  0xf3   : > { %v634_v10 = vpop.f32.mrf.mxu0  ;;  %v730_v32 = vadd.f32 %v729_v9, %v632_v8 }
  0xf4   : > { %v731_v13 = vpop.f32.mrf.mxu1 }
  0xf5   : > { %v732_v35 = vadd.f32 %v731_v13, %v634_v10 }
  0xfd   : > { %v638_v11 = vpop.f32.mrf.mxu0 }
  0xfe   : > { %v735_v15 = vpop.f32.mrf.mxu1 }
  0xff   : > { %v640_v14 = vpop.f32.mrf.mxu0  ;;  %v736_v41 = vadd.f32 %v735_v15, %v638_v11 }
 0x100   : > { %v737_v17 = vpop.f32.mrf.mxu1 }
 0x101   : > { %v738_v46 = vadd.f32 %v737_v17, %v640_v14 }
 0x103   : > { %v644_v16 = vpop.f32.mrf.mxu0 }
 0x104   : > { %v741_v19 = vpop.f32.mrf.mxu1 }
 0x105   : > { %v646_v18 = vpop.f32.mrf.mxu0  ;;  %v742_v52 = vadd.f32 %v741_v19, %v644_v16 }
 0x106   : > { %v743_v22 = vpop.f32.mrf.mxu1 }
 0x107   : > { %v744_v57 = vadd.f32 %v743_v22, %v646_v18 }
 0x109   : > { %v650_v20 = vpop.f32.mrf.mxu0 }
 0x10a   : > { %v747_v24 = vpop.f32.mrf.mxu1 }
 0x10b   : > { %v652_v21 = vpop.f32.mrf.mxu0  ;;  %v748_v3 = vadd.f32 %v747_v24, %v650_v20 }
 0x10c   : > { %v749_v39 = vpop.f32.mrf.mxu1 }
 0x10d   : > { %v750_v7 = vadd.f32 %v749_v39, %v652_v21 }
 0x110   : > { %v859_v23 = vpop.f32.mrf.mxu0 }
 0x111   : > { %v882_v36 = vadd.f32 %v859_v23, %v730_v32 }
 0x112   : > { %v861_v38 = vpop.f32.mrf.mxu0 }
 0x113   : > { %v997_v26 = vpop.f32.mrf.mxu1  ;;  %v883_v42 = vadd.f32 %v861_v38, %v732_v35 }
 0x114   : > { %v1020_v47 = vadd.f32 %v997_v26, %v882_v36 }
 0x115   : > { %v865_v25 = vpop.f32.mrf.mxu0  ;;  %v999_v0 = vpop.f32.mrf.mxu1 }
 0x116   : > { %v884_v48 = vadd.f32 %v865_v25, %v736_v41  ;;  %v1021_v54 = vadd.f32 %v999_v0, %v883_v42  ;;  %v1424_v42 = vld [vmem:[%s5726_s3] sm:$0xff] }
 0x117   : > { %v867_v27 = vpop.f32.mrf.mxu0  ;;  %v1003_v29 = vpop.f32.mrf.mxu1 }
 0x118   : > { %v885_v55 = vadd.f32 %v867_v27, %v738_v46  ;;  %v1022_v60 = vadd.f32 %v1003_v29, %v884_v48  ;;  %v3401_v46 = vld [vmem:[%s5728_s5 + $0x140] sm:$0xff]  ;;  %v3399_v48 = vld [vmem:[%s5728_s5 + $0x130] sm:$0xff] }
 0x119   : > { %v1005_v33 = vpop.f32.mrf.mxu1 }
 0x11a   : > { %v871_v12 = vpop.f32.mrf.mxu0  ;;  %v1023_v4 = vadd.f32 %v1005_v33, %v885_v55 }
 0x11b   : > { %v1009_v44 = vpop.f32.mrf.mxu1  ;;  %v886_v61 = vadd.f32 %v871_v12, %v742_v52 }
 0x11c   : > { %v873_v30 = vpop.f32.mrf.mxu0 }
 0x11d   : > { %v1011_v58 = vpop.f32.mrf.mxu1  ;;  %v887_v63 = vadd.f32 %v873_v30, %v744_v57  ;;  %v1024_v10 = vadd.f32 %v1009_v44, %v886_v61  ;;  %v3403_v44 = vld [vmem:[%s5728_s5 + $0x150] sm:$0xf] }
 0x11e   : > { %v877_v34 = vpop.f32.mrf.mxu0 }
 0x11f   : > { %v1015_v8 = vpop.f32.mrf.mxu1  ;;  %v888_v11 = vadd.f32 %v877_v34, %v748_v3  ;;  %v1025_v15 = vadd.f32 %v1011_v58, %v887_v63 }
 0x120   : > { %v879_v45 = vpop.f32.mrf.mxu0 }
 0x121   : > { %v889_v19 = vadd.f32 %v879_v45, %v750_v7  ;;  %v1017_v20 = vpop.f32.mrf.mxu1  ;;  %v1026_v24 = vadd.f32 %v1015_v8, %v888_v11  ;;  %v3402_v45 = vld [vmem:[%s5728_s5 + $0x148] sm:$0xff]  ;;  %v3378_v11 = vld [vmem:[%s5726_s3 + $0x10] sm:$0xff] }
 0x123   : > { %v1027_v0 = vadd.f32 %v1017_v20, %v889_v19  ;;  %v1613_v19 = vld [vmem:[%s5728_s5 + $0x80] sm:$0xff]  ;;  %v1610_v20 = vld [vmem:[%s5728_s5 + $0x68] sm:$0xff] }
 0x12a   : > { %v1135_v49 = vpop.f32.mrf.mxu0 }
 0x12b   : > { %v1158_v56 = vadd.f32 %v1135_v49, %v1020_v47  ;;  %v3400_v47 = vld [vmem:[%s5728_s5 + $0x138] sm:$0xff]  ;;  %v3398_v49 = vld [vmem:[%s5728_s5 + $0x128] sm:$0xff] }
 0x12c   : > { %v1137_v59 = vpop.f32.mrf.mxu0 }
 0x12d   : > { %v1159_v62 = vadd.f32 %v1137_v59, %v1021_v54  ;;  %v1178_v1 = vadd.f32 %v1171_v50, %v1158_v56 }
 0x12e   : > { %v1141_v2 = vpop.f32.mrf.mxu0 }
 0x12f   : > { %v1179_v5 = vadd.f32 %v1175_v51, %v1159_v62  ;;  %v1160_v6 = vadd.f32 %v1141_v2, %v1022_v60  ;;  %v1186_v16 = vmax.f32 %v1178_v1, 0.0 }
 0x130   : > { %v1143_v9 = vpop.f32.mrf.mxu0 }
 0x131   : > { %v1187_v13 = vmax.f32 %v1179_v5, 0.0  ;;  %v1161_v14 = vadd.f32 %v1143_v9, %v1023_v4  ;;  %v1180_v17 = vadd.f32 %v1171_v50, %v1160_v6 }
 0x132   : > { %v1147_v18 = vpop.f32.mrf.mxu0 }
 0x133   : > { %v1181_v22 = vadd.f32 %v1175_v51, %v1161_v14  ;;  %v1162_v23 = vadd.f32 %v1147_v18, %v1024_v10  ;;  %3346 = vmatprep.mubr.msk.f32.mxu1 %vm1215_vm5, %v1187_v13  ;;  %3371 = vmatprep.mubr.msk.f32.mxu0 %vm1215_vm5, %v1187_v13  ;;  %v1188_v25 = vmax.f32 %v1180_v17, 0.0  ;;  %v1425_v10 = vld [vmem:[%s5726_s3 + $0x8] sm:$0x3f]  ;;  %v3379_v13 = vld [vmem:[%s5726_s3 + $0x18] sm:$0x3f]  ;;  %v1615_v17 = vld [vmem:[%s5728_s5 + $0x90] sm:$0xff] }
 0x134   : > { %v1149_v21 = vpop.f32.mrf.mxu0  ;;  %1293 = vmatmul.mubr.f32.vlgmr.msra.gmra.mxu1 %v1186_v16  ;;  %1400 = vmatmul.mubr.f32.vlgmr.msra.gmra.mxu0 %v1186_v16  ;;  %v1618_v14 = vld [vmem:[%s5728_s5 + $0xa8] sm:$0xf]  ;;  %v1616_v16 = vld [vmem:[%s5728_s5 + $0x98] sm:$0xff] }
 0x135   : > { %v1189_v38 = vmax.f32 %v1181_v22, 0.0  ;;  %v1163_v39 = vadd.f32 %v1149_v21, %v1025_v15  ;;  %v1182_v26 = vadd.f32 %v1171_v50, %v1162_v23  ;;  %3406 = vmatpush1.msk.msra.mxu0 %vm1053_vm4, %v3403_v44  ;;  %v1617_v15 = vld [vmem:[%s5728_s5 + $0xa0] sm:$0xf]  ;;  %v1614_v18 = vld [vmem:[%s5728_s5 + $0x88] sm:$0xff]  ;;  %v1612_v22 = vld [vmem:[%s5728_s5 + $0x78] sm:$0xff] }
 0x136   : > { %v1153_v27 = vpop.f32.mrf.mxu0  ;;  %1670 = vmatprep.subr.mxu0 %v3402_v45  ;;  %v1611_v23 = vld [vmem:[%s5728_s5 + $0x70] sm:$0xff]  ;;  %v1609_v21 = vld [vmem:[%s5728_s5 + $0x60] sm:$0xff]  ;;  %v1598_v44 = vld [vmem:[%s5728_s5 + $0x8] sm:$0xff] }
 0x137   : > { %v1183_v12 = vadd.f32 %v1175_v51, %v1163_v39  ;;  %v1164_v28 = vadd.f32 %v1153_v27, %v1026_v24  ;;  %3347 = vmatprep.mubr.msk.f32.mxu1 %vm1215_vm5, %v1189_v38  ;;  %3372 = vmatprep.mubr.msk.f32.mxu0 %vm1215_vm5, %v1189_v38  ;;  %v1190_v33 = vmax.f32 %v1182_v26, 0.0  ;;  %v1608_v24 = vld [vmem:[%s5728_s5 + $0x58] sm:$0xff]  ;;  %v1607_v38 = vld [vmem:[%s5728_s5 + $0x50] sm:$0xff]  ;;  %v3394_v26 = vld [vmem:[%s5728_s5 + $0x108] sm:$0xff] }
 0x138   : > { %v1155_v29 = vpop.f32.mrf.mxu0  ;;  %1298 = vmatmul.mubr.f32.gmra.mxu1 %v1188_v25  ;;  %1405 = vmatmul.mubr.f32.gmra.mxu0 %v1188_v25  ;;  %v3395_v39 = vld [vmem:[%s5728_s5 + $0x110] sm:$0xff]  ;;  %v1606_v25 = vld [vmem:[%s5728_s5 + $0x48] sm:$0xff]  ;;  %v1605_v27 = vld [vmem:[%s5728_s5 + $0x40] sm:$0xff] }
 0x139   : > { %v1191_v30 = vmax.f32 %v1183_v12, 0.0  ;;  %v1165_v32 = vadd.f32 %v1155_v29, %v1027_v0  ;;  %v1184_v34 = vadd.f32 %v1171_v50, %v1164_v28  ;;  %1671 = vmatpush1.msra.mxu0 %v3401_v46  ;;  %v3397_v50 = vld [vmem:[%s5728_s5 + $0x120] sm:$0xff]  ;;  %v1604_v12 = vld [vmem:[%s5728_s5 + $0x38] sm:$0xff]  ;;  %v1603_v29 = vld [vmem:[%s5728_s5 + $0x30] sm:$0xff] }
 0x13a   : > { %1672 = vmatprep.subr.mxu0 %v3400_v47  ;;  %v3393_v0 = vld [vmem:[%s5728_s5 + $0x100] sm:$0xff]  ;;  %v3392_v28 = vld [vmem:[%s5728_s5 + $0xf8] sm:$0xff]  ;;  %v3386_v45 = vld [vmem:[%s5728_s5 + $0xc8] sm:$0xff] }
 0x13b   : > { %v1185_v35 = vadd.f32 %v1175_v51, %v1165_v32  ;;  %3348 = vmatprep.mubr.msk.f32.mxu1 %vm1215_vm5, %v1191_v30  ;;  %3373 = vmatprep.mubr.msk.f32.mxu0 %vm1215_vm5, %v1191_v30  ;;  %v1192_v41 = vmax.f32 %v1184_v34, 0.0  ;;  %v3396_v51 = vld [vmem:[%s5728_s5 + $0x118] sm:$0xff]  ;;  %v3391_v30 = vld [vmem:[%s5728_s5 + $0xf0] sm:$0xff]  ;;  %v1602_v32 = vld [vmem:[%s5728_s5 + $0x28] sm:$0xff] }
 0x13c   : > { %1303 = vmatmul.mubr.f32.gmra.mxu1 %v1190_v33  ;;  %1410 = vmatmul.mubr.f32.gmra.mxu0 %v1190_v33  ;;  %v3390_v33 = vld [vmem:[%s5728_s5 + $0xe8] sm:$0xff]  ;;  %v1601_v34 = vld [vmem:[%s5728_s5 + $0x20] sm:$0xff] }
 0x13d   : > { %v1193_v36 = vmax.f32 %v1185_v35, 0.0  ;;  %1673 = vmatpush1.msra.mxu0 %v3399_v48  ;;  %v3389_v35 = vld [vmem:[%s5728_s5 + $0xe0] sm:$0xff]  ;;  %v3460_v48 = vld [vmem:[%s5728_s5 + $0x2b8] sm:$0xf] }
 0x13e   : > { %1674 = vmatprep.subr.mxu0 %v3398_v49  ;;  %v1597_v46 = vld [vmem:[%s5728_s5] sm:$0xff]  ;;  %v3384_v49 = vld [vmem:[%s5728_s5 + $0xb8] sm:$0xff] }
 0x13f   : > { %3349 = vmatprep.mubr.msk.f32.mxu1 %vm1215_vm5, %v1193_v36  ;;  %3374 = vmatprep.mubr.msk.f32.mxu0 %vm1215_vm5, %v1193_v36  ;;  %v1600_v36 = vld [vmem:[%s5728_s5 + $0x18] sm:$0xff]  ;;  %v3385_v47 = vld [vmem:[%s5728_s5 + $0xc0] sm:$0xff] }
 0x140   : > { %1308 = vmatmul.mubr.f32.gmra.mxu1 %v1192_v41  ;;  %1415 = vmatmul.mubr.f32.gmra.mxu0 %v1192_v41  ;;  %v3388_v41 = vld [vmem:[%s5728_s5 + $0xd8] sm:$0xff] }
 0x141   : > { %1722 = vmatprep.mubr.f32.mxu0 %v3985_v53  ;;  %3681 = vmatprep.mubr.msk.f32.mxu1 %vm1426_vm6, %v1424_v42  ;;  %v1599_v42 = vld [vmem:[%s5728_s5 + $0x10] sm:$0xff] }
 0x142   : > { %1675 = vmatpush1.msra.mxu0 %v3397_v50  ;;  %v3383_v50 = vld [vmem:[%s5728_s5 + $0xb0] sm:$0xff] }
 0x143   : > { %1676 = vmatprep.subr.mxu0 %v3396_v51  ;;  %v3434_v51 = vld [vmem:[%s5728_s5 + $0x208] sm:$0xf] }
 0x144   : > { %1677 = vmatpush1.msra.mxu0 %v3395_v39  ;;  %v3422_v39 = vld [vmem:[%s5728_s5 + $0x1a8] sm:$0xff] }
 0x145   : > { %1678 = vmatprep.subr.mxu0 %v3394_v26  ;;  %v3421_v26 = vld [vmem:[%s5728_s5 + $0x1a0] sm:$0xff] }
 0x146   : > { %1679 = vmatpush1.msra.mxu0 %v3393_v0  ;;  %v3420_v0 = vld [vmem:[%s5728_s5 + $0x198] sm:$0xff] }
 0x147   : > { %1680 = vmatprep.subr.mxu0 %v3392_v28  ;;  %v3419_v28 = vld [vmem:[%s5728_s5 + $0x190] sm:$0xff] }
 0x148   : > { %1681 = vmatpush1.msra.mxu0 %v3391_v30  ;;  %v3418_v30 = vld [vmem:[%s5728_s5 + $0x188] sm:$0xff] }
 0x149   : > { %1682 = vmatprep.subr.mxu0 %v3390_v33  ;;  %v3417_v33 = vld [vmem:[%s5728_s5 + $0x180] sm:$0xff] }
 0x14a   : > { %1683 = vmatpush1.msra.mxu0 %v3389_v35 }
 0x14b   : > { %1684 = vmatprep.subr.mxu0 %v3388_v41  ;;  %v3415_v41 = vld [vmem:[%s5728_s5 + $0x170] sm:$0xff] }
 0x14c   : > { %1685 = vmatpush1.msra.mxu0 %v3387_v43  ;;  %v3414_v43 = vld [vmem:[%s5728_s5 + $0x168] sm:$0xff] }
 0x14d   : > { %1686 = vmatprep.subr.mxu0 %v3386_v45 }
 0x14e   : > { %1687 = vmatpush1.msra.mxu0 %v3385_v47 }
 0x14f   : > { %1688 = vmatprep.subr.mxu0 %v3384_v49  ;;  %v3485_v49 = vld [vmem:[%s5728_s5 + $0x360] sm:$0xf] }
 0x150   : > { %1689 = vmatpush1.msra.mxu0 %v3383_v50 }
 0x151   : > { %3435 = vmatprep.subr.msk.mxu0 %vm1053_vm4, %v3434_v51  ;;  %v3484_v51 = vld [vmem:[%s5728_s5 + $0x358] sm:$0xff] }
 0x1f4   : > { %v1294_v52 = vpop.f32.mrf.mxu1  ;;  %v1401_v54 = vpop.f32.mrf.mxu0 }
 0x1f5   : > { %v1420_v9 = vmax.f32 %v1294_v52, %v1401_v54 }
 0x1f6   : > { %v1296_v55 = vpop.f32.mrf.mxu1  ;;  %v1403_v56 = vpop.f32.mrf.mxu0 }
 0x1f8   : > { %v1299_v57 = vpop.f32.mrf.mxu1  ;;  %v1406_v58 = vpop.f32.mrf.mxu0 }
 0x1f9   : > { %v1421_v8 = vmax.f32 %v1299_v57, %v1406_v58 }
 0x1fa   : > { %v1301_v59 = vpop.f32.mrf.mxu1  ;;  %v1408_v60 = vpop.f32.mrf.mxu0 }
 0x1fb   : > { %v3459_v59 = vld [vmem:[%s5728_s5 + $0x2b0] sm:$0xf]  ;;  %v3458_v60 = vld [vmem:[%s5728_s5 + $0x2a8] sm:$0xff] }
 0x1fc   : > { %v1304_v61 = vpop.f32.mrf.mxu1  ;;  %v1411_v62 = vpop.f32.mrf.mxu0 }
 0x1fd   : > { %v1422_v7 = vmax.f32 %v1304_v61, %v1411_v62  ;;  %v3457_v61 = vld [vmem:[%s5728_s5 + $0x2a0] sm:$0xff] }
 0x1fe   : > { %v1306_v63 = vpop.f32.mrf.mxu1  ;;  %v1413_v1 = vpop.f32.mrf.mxu0 }
 0x1ff   : > { %v3433_v1 = vld [vmem:[%s5728_s5 + $0x200] sm:$0xf] }
 0x200   : > { %v1309_v2 = vpop.f32.mrf.mxu1  ;;  %v1416_v3 = vpop.f32.mrf.mxu0 }
 0x201   : > { %v1423_v4 = vmax.f32 %v1309_v2, %v1416_v3  ;;  %v3456_v2 = vld [vmem:[%s5728_s5 + $0x298] sm:$0xff] }
 0x202   : > { %v1311_v5 = vpop.f32.mrf.mxu1  ;;  %v1418_v6 = vpop.f32.mrf.mxu0 }
 0x203   : > { %3673 = vmatprep.subr.msk.mxu1 %vm1053_vm4, %v1423_v4  ;;  %v3455_v5 = vld [vmem:[%s5728_s5 + $0x290] sm:$0xff] }
 0x204   : > { %3674 = vmatpush3.msk.msra.mxu1 %vm1053_vm4, %v1423_v4  ;;  %v3431_v6 = vld [vmem:[%s5728_s5 + $0x1f0] sm:$0xff] }
 0x205   : > { %3675 = vmatprep.subr.mxu1 %v1422_v7 }
 0x206   : > { %3676 = vmatpush3.msra.mxu1 %v1422_v7 }
 0x207   : > { %3677 = vmatprep.subr.mxu1 %v1421_v8 }
 0x208   : > { %3678 = vmatpush3.msra.mxu1 %v1421_v8 }
 0x209   : > { %3679 = vmatprep.subr.mxu1 %v1420_v9 }
 0x20a   : > { %3680 = vmatpush3.msra.mxu1 %v1420_v9 }
 0x20b   : > { %3684 = vmatprep.subr.msk.mxu1 %vm1053_vm4, %v1423_v4  ;;  %3682 = vmatmul.mubr.msk.f32.vlgmr.msra.gmra.mxu1 %vm1426_vm6, %v1425_v10  ;;  %v3452_v10 = vld [vmem:[%s5728_s5 + $0x278] sm:$0xff] }
 0x20c   : > { %3685 = vmatpush3.msk.msra.mxu1 %vm1053_vm4, %v1423_v4  ;;  %3692 = vmatprep.mubr.msk.f32.mxu1 %vm1426_vm6, %v3378_v11  ;;  %v3432_v4 = vld [vmem:[%s5728_s5 + $0x1f8] sm:$0xff]  ;;  %v3429_v11 = vld [vmem:[%s5728_s5 + $0x1e0] sm:$0xff] }
 0x20d   : > { %3686 = vmatprep.subr.mxu1 %v1422_v7 }
 0x20e   : > { %3687 = vmatpush3.msra.mxu1 %v1422_v7  ;;  %v3454_v7 = vld [vmem:[%s5728_s5 + $0x288] sm:$0xff] }
 0x20f   : > { %3688 = vmatprep.subr.mxu1 %v1421_v8 }
 0x210   : > { %3689 = vmatpush3.msra.mxu1 %v1421_v8  ;;  %v3430_v8 = vld [vmem:[%s5728_s5 + $0x1e8] sm:$0xff] }
 0x211   : > { %3690 = vmatprep.subr.mxu1 %v1420_v9 }
 0x212   : > { %3691 = vmatpush3.msra.mxu1 %v1420_v9  ;;  %v3453_v9 = vld [vmem:[%s5728_s5 + $0x280] sm:$0xff] }
 0x213   : > { %3693 = vmatmul.mubr.msk.f32.vlgmr.msra.gmra.mxu1 %vm1426_vm6, %v3379_v13  ;;  %3409 = vmatprep.subr.msk.mxu1 %vm1053_vm4, %v1618_v14  ;;  %v3451_v13 = vld [vmem:[%s5728_s5 + $0x270] sm:$0xff]  ;;  %v3428_v14 = vld [vmem:[%s5728_s5 + $0x1d8] sm:$0xff] }
 0x214   : > { %3410 = vmatpush1.msk.msra.mxu1 %vm1053_vm4, %v1617_v15  ;;  %1809 = vmatprep.mubr.f32.mxu1 %v3985_v53  ;;  %v3450_v15 = vld [vmem:[%s5728_s5 + $0x268] sm:$0xff] }
 0x215   : > { %1757 = vmatprep.subr.mxu1 %v1616_v16  ;;  %v3427_v16 = vld [vmem:[%s5728_s5 + $0x1d0] sm:$0xff] }
 0x216   : > { %1758 = vmatpush1.msra.mxu1 %v1615_v17  ;;  %v3449_v17 = vld [vmem:[%s5728_s5 + $0x260] sm:$0xff] }
 0x217   : > { %1759 = vmatprep.subr.mxu1 %v1614_v18  ;;  %v3426_v18 = vld [vmem:[%s5728_s5 + $0x1c8] sm:$0xff] }
 0x218   : > { %1760 = vmatpush1.msra.mxu1 %v1613_v19  ;;  %v3448_v19 = vld [vmem:[%s5728_s5 + $0x258] sm:$0xff] }
 0x219   : > { %1761 = vmatprep.subr.mxu1 %v1612_v22  ;;  %v3425_v22 = vld [vmem:[%s5728_s5 + $0x1c0] sm:$0xff] }
 0x21a   : > { %1762 = vmatpush1.msra.mxu1 %v1611_v23  ;;  %v3447_v23 = vld [vmem:[%s5728_s5 + $0x250] sm:$0xff] }
 0x21b   : > { %1763 = vmatprep.subr.mxu1 %v1610_v20  ;;  %v3424_v20 = vld [vmem:[%s5728_s5 + $0x1b8] sm:$0xff] }
 0x21c   : > { %1764 = vmatpush1.msra.mxu1 %v1609_v21  ;;  %v3446_v21 = vld [vmem:[%s5728_s5 + $0x248] sm:$0xff] }
 0x21d   : > { %1765 = vmatprep.subr.mxu1 %v1608_v24  ;;  %v3423_v24 = vld [vmem:[%s5728_s5 + $0x1b0] sm:$0xff] }
 0x21e   : > { %1766 = vmatpush1.msra.mxu1 %v1607_v38  ;;  %v3445_v38 = vld [vmem:[%s5728_s5 + $0x240] sm:$0xff] }
 0x21f   : > { %1767 = vmatprep.subr.mxu1 %v1606_v25  ;;  %v3444_v25 = vld [vmem:[%s5728_s5 + $0x238] sm:$0xff] }
 0x220   : > { %1768 = vmatpush1.msra.mxu1 %v1605_v27  ;;  %v3443_v27 = vld [vmem:[%s5728_s5 + $0x230] sm:$0xff] }
 0x221   : > { %1769 = vmatprep.subr.mxu1 %v1604_v12  ;;  %v3442_v12 = vld [vmem:[%s5728_s5 + $0x228] sm:$0xff] }
 0x222   : > { %1770 = vmatpush1.msra.mxu1 %v1603_v29  ;;  %v3441_v29 = vld [vmem:[%s5728_s5 + $0x220] sm:$0xff] }
 0x223   : > { %1771 = vmatprep.subr.mxu1 %v1602_v32  ;;  %v3440_v32 = vld [vmem:[%s5728_s5 + $0x218] sm:$0xff] }
 0x224   : > { %1772 = vmatpush1.msra.mxu1 %v1601_v34  ;;  %v3439_v34 = vld [vmem:[%s5728_s5 + $0x210] sm:$0xff] }
 0x225   : > { %1773 = vmatprep.subr.mxu1 %v1600_v36  ;;  %v3416_v36 = vld [vmem:[%s5728_s5 + $0x178] sm:$0xff] }
 0x226   : > { %1774 = vmatpush1.msra.mxu1 %v1599_v42 }
 0x227   : > { %1775 = vmatprep.subr.mxu1 %v1598_v44 }
 0x228   : > { %1776 = vmatpush1.msra.mxu1 %v1597_v46  ;;  %v3413_v46 = vld [vmem:[%s5728_s5 + $0x160] sm:$0xff] }
 0x229   : > { %3461 = vmatprep.subr.msk.mxu1 %vm1053_vm4, %v3460_v48  ;;  %v3486_v48 = vld [vmem:[%s5728_s5 + $0x368] sm:$0xf] }
 0x2cb   : > { %v3683_v52 = vpop.f32.mrf.mxu1 }
 0x2cd   : > { %v1502_v54 = vpop.f32.mrf.mxu1 }
 0x2d3   : > { %v3694_v55 = vpop.f32.mrf.mxu1 }
 0x2d4   : > { %v4929_v56 = vmax.f32 %v3683_v52, %v3694_v55  ;;  %v3483_v52 = vld [vmem:[%s5728_s5 + $0x350] sm:$0xff]  ;;  %v3481_v55 = vld [vmem:[%s5728_s5 + $0x340] sm:$0xff] }
 0x2d5   : > { %v1586_v57 = vpop.f32.mrf.mxu1 }
 0x2d6   : > { %v4931_v58 = vmax.f32 %v1502_v54, %v1586_v57  ;;  %v1645_v63 = vrot.slane %v4929_v56, 1  ;;  %v1963_v42 = vrot.slane %v4929_v56, 3  ;;  %v1846_v47 = vrot.slane %v4929_v56, 2  ;;  %v3482_v54 = vld [vmem:[%s5728_s5 + $0x348] sm:$0xff]  ;;  %v3480_v57 = vld [vmem:[%s5728_s5 + $0x338] sm:$0xff] }
 0x2d8   : > { %3411 = vmatmul.mubr.msk.f32.vlgmr.msra.gmra.mxu1 %vm1647_vm7, %v4931_v58  ;;  %v1644_v62 = vrot.slane %v4931_v58, 1  ;;  %v1962_v35 = vrot.slane %v4931_v58, 3  ;;  %v1845_v44 = vrot.slane %v4931_v58, 2 }
 0x2d9   : > { %3462 = vmatpush1.msk.msra.mxu1 %vm1053_vm4, %v3459_v59  ;;  %1815 = vmatprep.mubr.f32.mxu1 %v3985_v53  ;;  %v3479_v59 = vld [vmem:[%s5728_s5 + $0x330] sm:$0xff] }
 0x2da   : > { %1987 = vmatprep.subr.mxu1 %v3458_v60  ;;  %v1646_v3 = vsel %vm549_vm0, %v1644_v62, %v1645_v63  ;;  %v1964_v45 = vsel %vm915_vm3, %v1962_v35, %v1963_v42  ;;  %v1847_v50 = vsel %vm777_vm2, %v1845_v44, %v1846_v47  ;;  %v3478_v60 = vld [vmem:[%s5728_s5 + $0x328] sm:$0xff]  ;;  %v3476_v62 = vld [vmem:[%s5728_s5 + $0x318] sm:$0xff]  ;;  %v2193_v44 = vld [vmem:[%s5731_s8] sm:$0xff] }
 0x2db   : > { %1988 = vmatpush1.msra.mxu1 %v3457_v61  ;;  %3407 = vmatmul.mubr.msk.f32.vlgmr.msra.gmra.mxu0 %vm1647_vm7, %v1646_v3  ;;  %v3477_v61 = vld [vmem:[%s5728_s5 + $0x320] sm:$0xff]  ;;  %v3472_v3 = vld [vmem:[%s5728_s5 + $0x2f8] sm:$0xff] }
 0x2dc   : > { %3436 = vmatpush1.msk.msra.mxu0 %vm1053_vm4, %v3433_v1  ;;  %1989 = vmatprep.subr.mxu1 %v3456_v2  ;;  %v3474_v1 = vld [vmem:[%s5728_s5 + $0x308] sm:$0xff]  ;;  %v3473_v2 = vld [vmem:[%s5728_s5 + $0x300] sm:$0xff]  ;;  %v3496_v35 = vld [vmem:[%s5731_s8 + $0xb8] sm:$0xff] }
 0x2dd   : > { %3412 = vmatmul.mubr.msk.f32.gmra.mxu1 %vm1647_vm7, %v4929_v56  ;;  %1870 = vmatprep.subr.mxu0 %v3432_v4  ;;  %v3471_v4 = vld [vmem:[%s5728_s5 + $0x2f0] sm:$0xff] }
 0x2de   : > { %1990 = vmatpush1.msra.mxu1 %v3455_v5  ;;  %1871 = vmatpush1.msra.mxu0 %v3431_v6  ;;  %v3470_v5 = vld [vmem:[%s5728_s5 + $0x2e8] sm:$0xff]  ;;  %v3469_v6 = vld [vmem:[%s5728_s5 + $0x2e0] sm:$0xff] }
 0x2df   : > { %1991 = vmatprep.subr.mxu1 %v3454_v7  ;;  %1728 = vmatprep.mubr.f32.mxu0 %v3985_v53  ;;  %v3468_v7 = vld [vmem:[%s5728_s5 + $0x2d8] sm:$0xff] }
 0x2e0   : > { %1872 = vmatprep.subr.mxu0 %v3430_v8  ;;  %1992 = vmatpush1.msra.mxu1 %v3453_v9  ;;  %v3467_v8 = vld [vmem:[%s5728_s5 + $0x2d0] sm:$0xff]  ;;  %v3466_v9 = vld [vmem:[%s5728_s5 + $0x2c8] sm:$0xff] }
 0x2e1   : > { %3408 = vmatmul.mubr.msk.f32.gmra.mxu0 %vm1647_vm7, %v1645_v63  ;;  %1993 = vmatprep.subr.mxu1 %v3452_v10  ;;  %v3475_v63 = vld [vmem:[%s5728_s5 + $0x310] sm:$0xff]  ;;  %v2079_v10 = vrot.slane %v4931_v58, 4  ;;  %v2208_v58 = vld [vmem:[%s5731_s8 + $0x78] sm:$0xff] }
 0x2e2   : > { %1873 = vmatpush1.msra.mxu0 %v3429_v11  ;;  %1994 = vmatpush1.msra.mxu1 %v3451_v13  ;;  %v3465_v11 = vld [vmem:[%s5728_s5 + $0x2c0] sm:$0xff]  ;;  %v2080_v13 = vrot.slane %v4929_v56, 4  ;;  %v3508_v56 = vld [vmem:[%s5731_s8 + $0x118] sm:$0xff] }
 0x2e3   : > { %1874 = vmatprep.subr.mxu0 %v3428_v14  ;;  %1995 = vmatprep.subr.mxu1 %v3450_v15  ;;  %v2207_v15 = vld [vmem:[%s5731_s8 + $0x70] sm:$0xff] }
 0x2e4   : > { %1875 = vmatpush1.msra.mxu0 %v3427_v16  ;;  %1996 = vmatpush1.msra.mxu1 %v3449_v17  ;;  %v2081_v14 = vsel %vm1053_vm4, %v2079_v10, %v2080_v13  ;;  %v3507_v16 = vld [vmem:[%s5731_s8 + $0x110] sm:$0xff]  ;;  %v2206_v17 = vld [vmem:[%s5731_s8 + $0x68] sm:$0xff] }
 0x2e5   : > { %1876 = vmatprep.subr.mxu0 %v3426_v18  ;;  %1997 = vmatprep.subr.mxu1 %v3448_v19  ;;  %v3506_v18 = vld [vmem:[%s5731_s8 + $0x108] sm:$0xff]  ;;  %v2205_v19 = vld [vmem:[%s5731_s8 + $0x60] sm:$0xff] }
 0x2e6   : > { %1877 = vmatpush1.msra.mxu0 %v3425_v22  ;;  %1998 = vmatpush1.msra.mxu1 %v3447_v23  ;;  %v3505_v22 = vld [vmem:[%s5731_s8 + $0x100] sm:$0xff]  ;;  %v2204_v23 = vld [vmem:[%s5731_s8 + $0x58] sm:$0xff] }
 0x2e7   : > { %1878 = vmatprep.subr.mxu0 %v3424_v20  ;;  %1999 = vmatprep.subr.mxu1 %v3446_v21  ;;  %v3504_v20 = vld [vmem:[%s5731_s8 + $0xf8] sm:$0xff]  ;;  %v2203_v21 = vld [vmem:[%s5731_s8 + $0x50] sm:$0xff] }
 0x2e8   : > { %1879 = vmatpush1.msra.mxu0 %v3423_v24  ;;  %2000 = vmatpush1.msra.mxu1 %v3445_v38  ;;  %v3503_v24 = vld [vmem:[%s5731_s8 + $0xf0] sm:$0xff]  ;;  %v2202_v38 = vld [vmem:[%s5731_s8 + $0x48] sm:$0xff] }
 0x2e9   : > { %1880 = vmatprep.subr.mxu0 %v3422_v39  ;;  %2001 = vmatprep.subr.mxu1 %v3444_v25  ;;  %v3502_v39 = vld [vmem:[%s5731_s8 + $0xe8] sm:$0xff]  ;;  %v2201_v25 = vld [vmem:[%s5731_s8 + $0x40] sm:$0xff] }
 0x2ea   : > { %1881 = vmatpush1.msra.mxu0 %v3421_v26  ;;  %2002 = vmatpush1.msra.mxu1 %v3443_v27  ;;  %v3501_v26 = vld [vmem:[%s5731_s8 + $0xe0] sm:$0xff]  ;;  %v2200_v27 = vld [vmem:[%s5731_s8 + $0x38] sm:$0xff] }
 0x2eb   : > { %1882 = vmatprep.subr.mxu0 %v3420_v0  ;;  %2003 = vmatprep.subr.mxu1 %v3442_v12  ;;  %v3500_v0 = vld [vmem:[%s5731_s8 + $0xd8] sm:$0xff]  ;;  %v2199_v12 = vld [vmem:[%s5731_s8 + $0x30] sm:$0xff] }
 0x2ec   : > { %1883 = vmatpush1.msra.mxu0 %v3419_v28  ;;  %2004 = vmatpush1.msra.mxu1 %v3441_v29  ;;  %v3499_v28 = vld [vmem:[%s5731_s8 + $0xd0] sm:$0xff]  ;;  %v2198_v29 = vld [vmem:[%s5731_s8 + $0x28] sm:$0xff] }
 0x2ed   : > { %1884 = vmatprep.subr.mxu0 %v3418_v30  ;;  %2005 = vmatprep.subr.mxu1 %v3440_v32  ;;  %v3498_v30 = vld [vmem:[%s5731_s8 + $0xc8] sm:$0xff]  ;;  %v2197_v32 = vld [vmem:[%s5731_s8 + $0x20] sm:$0xff] }
 0x2ee   : > { %1885 = vmatpush1.msra.mxu0 %v3417_v33  ;;  %2006 = vmatpush1.msra.mxu1 %v3439_v34  ;;  %v3497_v33 = vld [vmem:[%s5731_s8 + $0xc0] sm:$0xff]  ;;  %v2196_v34 = vld [vmem:[%s5731_s8 + $0x18] sm:$0xff] }
 0x2ef   : > { %1886 = vmatprep.subr.mxu0 %v3416_v36  ;;  %2039 = vmatprep.mubr.f32.mxu1 %v3985_v53  ;;  %v2195_v36 = vld [vmem:[%s5731_s8 + $0x10] sm:$0xff] }
 0x2f0   : > { %1887 = vmatpush1.msra.mxu0 %v3415_v41  ;;  %3463 = vmatmul.mubr.msk.f32.vlgmr.msra.gmra.mxu1 %vm1647_vm7, %v1964_v45  ;;  %v3495_v41 = vld [vmem:[%s5731_s8 + $0xb0] sm:$0xff]  ;;  %v3493_v45 = vld [vmem:[%s5731_s8 + $0xa0] sm:$0xff] }
 0x2f1   : > { %1888 = vmatprep.subr.mxu0 %v3414_v43  ;;  %1922 = vmatprep.mubr.f32.mxu0 %v3985_v53  ;;  %v3494_v43 = vld [vmem:[%s5731_s8 + $0xa8] sm:$0xff] }
 0x2f2   : > { %1889 = vmatpush1.msra.mxu0 %v3413_v46  ;;  %2045 = vmatprep.mubr.f32.mxu1 %v3985_v53  ;;  %v2212_v46 = vld [vmem:[%s5731_s8 + $0x98] sm:$0xff] }
 0x2f3   : > { %3437 = vmatmul.mubr.msk.f32.vlgmr.msra.gmra.mxu0 %vm1647_vm7, %v1847_v50  ;;  %3487 = vmatprep.subr.msk.mxu0 %vm1053_vm4, %v3486_v48  ;;  %v2211_v48 = vld [vmem:[%s5731_s8 + $0x90] sm:$0xff]  ;;  %v2210_v50 = vld [vmem:[%s5731_s8 + $0x88] sm:$0xff] }
 0x2f4   : > { %3464 = vmatmul.mubr.msk.f32.gmra.mxu1 %vm1647_vm7, %v1963_v42  ;;  %3488 = vmatpush1.msk.msra.mxu0 %vm1053_vm4, %v3485_v49  ;;  %v2194_v42 = vld [vmem:[%s5731_s8 + $0x8] sm:$0xff]  ;;  %v3511_v49 = vld [vmem:[%s5731_s8 + $0x130] sm:$0xff] }
 0x2f5   : > { %2104 = vmatprep.subr.mxu0 %v3484_v51  ;;  %1928 = vmatprep.mubr.f32.mxu0 %v3985_v53  ;;  %v3510_v51 = vld [vmem:[%s5731_s8 + $0x128] sm:$0xff] }
 0x2f6   : > { %2105 = vmatpush1.msra.mxu0 %v3483_v52  ;;  %2220 = vmatprep.subr.mxu1 %v3985_v53  ;;  %v2209_v52 = vld [vmem:[%s5731_s8 + $0x80] sm:$0xff] }
 0x2f7   : > { %3438 = vmatmul.mubr.msk.f32.gmra.mxu0 %vm1647_vm7, %v1846_v47  ;;  %2106 = vmatprep.subr.mxu0 %v3482_v54  ;;  %v3512_v47 = vld [vmem:[%s5731_s8 + $0x138] sm:$0xff]  ;;  %v3509_v54 = vld [vmem:[%s5731_s8 + $0x120] sm:$0xff] }
 0x2f8   : > { %2107 = vmatpush1.msra.mxu0 %v3481_v55  ;;  %2156 = vmatprep.mubr.f32.mxu0 %v3985_v53 }
 0x2f9   : > { %2108 = vmatprep.subr.mxu0 %v3480_v57  ;;  %2221 = vmatpush1.msra.mxu1 %v2208_v58 }
 0x2fa   : > { %2109 = vmatpush1.msra.mxu0 %v3479_v59  ;;  %2222 = vmatprep.subr.mxu1 %v3985_v53 }
 0x2fb   : > { %2110 = vmatprep.subr.mxu0 %v3478_v60  ;;  %2223 = vmatpush1.msra.mxu1 %v2207_v15 }
 0x2fc   : > { %2111 = vmatpush1.msra.mxu0 %v3477_v61  ;;  %2224 = vmatprep.subr.mxu1 %v3985_v53 }
 0x2fd   : > { %2112 = vmatprep.subr.mxu0 %v3476_v62  ;;  %2225 = vmatpush1.msra.mxu1 %v2206_v17 }
 0x2fe   : > { %2113 = vmatpush1.msra.mxu0 %v3475_v63  ;;  %2226 = vmatprep.subr.mxu1 %v3985_v53 }
 0x2ff   : > { %2114 = vmatprep.subr.mxu0 %v3474_v1  ;;  %2227 = vmatpush1.msra.mxu1 %v2205_v19 }
 0x300   : > { %2115 = vmatpush1.msra.mxu0 %v3473_v2  ;;  %2228 = vmatprep.subr.mxu1 %v3985_v53 }
 0x301   : > { %2116 = vmatprep.subr.mxu0 %v3472_v3  ;;  %2229 = vmatpush1.msra.mxu1 %v2204_v23 }
 0x302   : > { %2117 = vmatpush1.msra.mxu0 %v3471_v4  ;;  %2230 = vmatprep.subr.mxu1 %v3985_v53 }
 0x303   : > { %2118 = vmatprep.subr.mxu0 %v3470_v5  ;;  %2231 = vmatpush1.msra.mxu1 %v2203_v21 }
 0x304   : > { %2119 = vmatpush1.msra.mxu0 %v3469_v6  ;;  %2232 = vmatprep.subr.mxu1 %v3985_v53 }
 0x305   : > { %2120 = vmatprep.subr.mxu0 %v3468_v7  ;;  %2233 = vmatpush1.msra.mxu1 %v2202_v38 }
 0x306   : > { %2121 = vmatpush1.msra.mxu0 %v3467_v8  ;;  %2234 = vmatprep.subr.mxu1 %v3985_v53 }
 0x307   : > { %2122 = vmatprep.subr.mxu0 %v3466_v9  ;;  %2235 = vmatpush1.msra.mxu1 %v2201_v25 }
 0x308   : > { %2123 = vmatpush1.msra.mxu0 %v3465_v11  ;;  %2236 = vmatprep.subr.mxu1 %v3985_v53 }
 0x309   : > { %3489 = vmatmul.mubr.msk.f32.vlgmr.msra.gmra.mxu0 %vm1647_vm7, %v2081_v14  ;;  %2316 = vmatprep.subr.mxu0 %v3985_v53 }
 0x30a   : > { %2162 = vmatprep.mubr.f32.mxu0 %v3985_v53  ;;  %2317 = vmatpush1.msra.mxu0 %v3508_v56 }
 0x30b   : > { %2318 = vmatprep.subr.mxu0 %v3985_v53  ;;  %2237 = vmatpush1.msra.mxu1 %v2200_v27 }
 0x30c   : > { %2319 = vmatpush1.msra.mxu0 %v3507_v16  ;;  %2238 = vmatprep.subr.mxu1 %v3985_v53 }
 0x30d   : > { %3490 = vmatmul.mubr.msk.f32.gmra.mxu0 %vm1647_vm7, %v2080_v13  ;;  %2320 = vmatprep.subr.mxu0 %v3985_v53  ;;  %v2173_v13 = vld [vmem:[%s5729_s6] sm:$0x3] }
 0x30e   : > { %2321 = vmatpush1.msra.mxu0 %v3506_v18  ;;  %2239 = vmatpush1.msra.mxu1 %v2199_v12  ;;  %v2178_v18 = vrot.slane %v2173_v13, %v1170_v37 }
 0x30f   : > { %2322 = vmatprep.subr.mxu0 %v3985_v53  ;;  %2240 = vmatprep.subr.mxu1 %v3985_v53 }
 0x310   : > { %2323 = vmatpush1.msra.mxu0 %v3505_v22  ;;  %2241 = vmatpush1.msra.mxu1 %v2198_v29 }
 0x311   : > { %2324 = vmatprep.subr.mxu0 %v3985_v53  ;;  %2242 = vmatprep.subr.mxu1 %v3985_v53 }
 0x312   : > { %2325 = vmatpush1.msra.mxu0 %v3504_v20  ;;  %2243 = vmatpush1.msra.mxu1 %v2197_v32  ;;  %v2182_v20 = vrot.slane %v2173_v13, %v1174_v40 }
 0x313   : > { %2326 = vmatprep.subr.mxu0 %v3985_v53  ;;  %2244 = vmatprep.subr.mxu1 %v3985_v53 }
 0x314   : > { %2327 = vmatpush1.msra.mxu0 %v3503_v24  ;;  %2245 = vmatpush1.msra.mxu1 %v2196_v34  ;;  %v3530_v34 = vld [vmem:[%s5732_s9 + $0x98] sm:$0xff] }
 0x315   : > { %2328 = vmatprep.subr.mxu0 %v3985_v53  ;;  %2246 = vmatprep.subr.mxu1 %v3985_v53 }
 0x316   : > { %2329 = vmatpush1.msra.mxu0 %v3502_v39  ;;  %2247 = vmatpush1.msra.mxu1 %v2195_v36  ;;  %v3528_v36 = vld [vmem:[%s5732_s9 + $0x88] sm:$0xff] }
 0x317   : > { %2330 = vmatprep.subr.mxu0 %v3985_v53  ;;  %2248 = vmatprep.subr.mxu1 %v3985_v53 }
 0x318   : > { %2331 = vmatpush1.msra.mxu0 %v3501_v26  ;;  %2249 = vmatpush1.msra.mxu1 %v2194_v42  ;;  %v3526_v42 = vld [vmem:[%s5732_s9 + $0x78] sm:$0xff] }
 0x319   : > { %2332 = vmatprep.subr.mxu0 %v3985_v53  ;;  %2250 = vmatprep.subr.mxu1 %v3985_v53 }
 0x31a   : > { %2333 = vmatpush1.msra.mxu0 %v3500_v0  ;;  %2251 = vmatpush1.msra.mxu1 %v2193_v44 }
 0x31b   : > { %2334 = vmatprep.subr.mxu0 %v3985_v53  ;;  %2276 = vmatprep.subr.mxu1 %v3985_v53 }
 0x31c   : > { %2335 = vmatpush1.msra.mxu0 %v3499_v28  ;;  %2277 = vmatpush2.msra.mxu1 %v2212_v46 }
 0x31d   : > { %2336 = vmatprep.subr.mxu0 %v3985_v53  ;;  %2278 = vmatprep.subr.mxu1 %v3985_v53 }
 0x31e   : > { %2337 = vmatpush1.msra.mxu0 %v3498_v30  ;;  %2279 = vmatpush2.msra.mxu1 %v2211_v48 }
 0x31f   : > { %2338 = vmatprep.subr.mxu0 %v3985_v53  ;;  %2280 = vmatprep.subr.mxu1 %v3985_v53 }
 0x320   : > { %2339 = vmatpush1.msra.mxu0 %v3497_v33  ;;  %2281 = vmatpush2.msra.mxu1 %v2210_v50 }
 0x321   : > { %2340 = vmatprep.subr.mxu0 %v3985_v53  ;;  %2282 = vmatprep.subr.mxu1 %v3985_v53 }
 0x322   : > { %2341 = vmatpush1.msra.mxu0 %v3496_v35  ;;  %2283 = vmatpush2.msra.mxu1 %v2209_v52  ;;  %v3529_v35 = vld [vmem:[%s5732_s9 + $0x90] sm:$0xff] }
 0x323   : > { %2342 = vmatprep.subr.mxu0 %v3985_v53  ;;  %3695 = vmatprep.subr.mxu1 %v3985_v53 }
 0x324   : > { %2343 = vmatpush1.msra.mxu0 %v3495_v41  ;;  %v3527_v41 = vld [vmem:[%s5732_s9 + $0x80] sm:$0xff] }
 0x325   : > { %2344 = vmatprep.subr.mxu0 %v3985_v53 }
 0x326   : > { %2345 = vmatpush1.msra.mxu0 %v3494_v43  ;;  %v3525_v43 = vld [vmem:[%s5732_s9 + $0x70] sm:$0xff] }
 0x327   : > { %2346 = vmatprep.subr.mxu0 %v3985_v53 }
 0x328   : > { %2347 = vmatpush1.msra.mxu0 %v3493_v45 }
 0x329   : > { %2372 = vmatprep.subr.mxu0 %v3985_v53 }
 0x32a   : > { %2373 = vmatpush2.msra.mxu0 %v3512_v47 }
 0x32b   : > { %2374 = vmatprep.subr.mxu0 %v3985_v53 }
 0x32c   : > { %2375 = vmatpush2.msra.mxu0 %v3511_v49 }
 0x32d   : > { %2376 = vmatprep.subr.mxu0 %v3985_v53 }
 0x32e   : > { %2377 = vmatpush2.msra.mxu0 %v3510_v51 }
 0x32f   : > { %2378 = vmatprep.subr.mxu0 %v3985_v53 }
 0x330   : > { %2379 = vmatpush2.msra.mxu0 %v3509_v54 }
 0x331   : > { %3732 = vmatprep.subr.mxu0 %v3985_v53 }
 0x398   : > { %v1811_v59 = vpop.f32.mrf.mxu1 }
 0x39a   : > { %v1813_v61 = vpop.f32.mrf.mxu1 }
 0x39b   : > { %v1724_v55 = vpop.f32.mrf.mxu0 }
 0x39c   : > { %v1812_v5 = vadd.f32 %v1811_v59, %v1724_v55  ;;  %v2393_v55 = vld [vmem:[%s5730_s7] sm:$0x1f]  ;;  %v2558_v59 = vld [vmem:[%s5732_s9 + $0x48] sm:$0xff] }
 0x39d   : > { %v1726_v57 = vpop.f32.mrf.mxu0  ;;  %v1817_v63 = vpop.f32.mrf.mxu1 }
 0x39e   : > { %v1814_v7 = vadd.f32 %v1813_v61, %v1726_v57  ;;  %v3517_v57 = vld [vmem:[%s5730_s7 + $0x8] sm:$0x1f]  ;;  %v2556_v61 = vld [vmem:[%s5732_s9 + $0x38] sm:$0xff] }
 0x39f   : > { %v1819_v2 = vpop.f32.mrf.mxu1 }
 0x3a1   : > { %v1730_v60 = vpop.f32.mrf.mxu0 }
 0x3a2   : > { %v1818_v10 = vadd.f32 %v1817_v63, %v1730_v60  ;;  %v2557_v60 = vld [vmem:[%s5732_s9 + $0x40] sm:$0xff]  ;;  %v2554_v63 = vld [vmem:[%s5732_s9 + $0x28] sm:$0xff] }
 0x3a3   : > { %v1732_v62 = vpop.f32.mrf.mxu0 }
 0x3a4   : > { %v1820_v58 = vadd.f32 %v1819_v2, %v1732_v62  ;;  %v2555_v62 = vld [vmem:[%s5732_s9 + $0x30] sm:$0xff]  ;;  %v2552_v2 = vld [vmem:[%s5732_s9 + $0x18] sm:$0xff] }
 0x3b0   : > { %v2041_v4 = vpop.f32.mrf.mxu1 }
 0x3b2   : > { %v2043_v9 = vpop.f32.mrf.mxu1 }
 0x3b3   : > { %v1924_v1 = vpop.f32.mrf.mxu0 }
 0x3b4   : > { %v1935_v8 = vadd.f32 %v1924_v1, %v1812_v5  ;;  %v2047_v16 = vpop.f32.mrf.mxu1  ;;  %v2553_v1 = vld [vmem:[%s5732_s9 + $0x20] sm:$0xff]  ;;  %v2550_v5 = vld [vmem:[%s5732_s9 + $0x8] sm:$0xff] }
 0x3b5   : > { %v1926_v3 = vpop.f32.mrf.mxu0 }
 0x3b6   : > { %v1936_v11 = vadd.f32 %v1926_v3, %v1814_v7  ;;  %v2052_v15 = vadd.f32 %v2041_v4, %v1935_v8  ;;  %v2049_v39 = vpop.f32.mrf.mxu1  ;;  %v2551_v3 = vld [vmem:[%s5732_s9 + $0x10] sm:$0xff]  ;;  %v3524_v4 = vld [vmem:[%s5732_s9 + $0x68] sm:$0xff]  ;;  %v2549_v7 = vld [vmem:[%s5732_s9] sm:$0xff] }
 0x3b7   : > { %v1930_v6 = vpop.f32.mrf.mxu0  ;;  %v3522_v8 = vld [vmem:[%s5732_s9 + $0x58] sm:$0xff] }
 0x3b8   : > { %v1937_v56 = vadd.f32 %v1930_v6, %v1818_v10  ;;  %v2053_v23 = vadd.f32 %v2043_v9, %v1936_v11  ;;  %v3523_v6 = vld [vmem:[%s5732_s9 + $0x60] sm:$0xff]  ;;  %v3521_v9 = vld [vmem:[%s5732_s9 + $0x50] sm:$0xff] }
 0x3b9   : > { %v1932_v14 = vpop.f32.mrf.mxu0 }
 0x3ba   : > { %v1938_v19 = vadd.f32 %v1932_v14, %v1820_v58  ;;  %v2054_v38 = vadd.f32 %v2047_v16, %v1937_v56  ;;  %v3541_v58 = vld [vmem:[%s5732_s9 + $0xe8] sm:$0xff]  ;;  %v3540_v16 = vld [vmem:[%s5732_s9 + $0xe0] sm:$0xff] }
 0x3bc   : > { %v2055_v12 = vadd.f32 %v2049_v39, %v1938_v19  ;;  %v3551_v19 = vld [vmem:[%s5732_s9 + $0x130] sm:$0xff]  ;;  %v3535_v39 = vld [vmem:[%s5732_s9 + $0xb8] sm:$0xff] }
 0x3c9   : > { %v2158_v17 = vpop.f32.mrf.mxu0 }
 0x3ca   : > { %v2169_v22 = vadd.f32 %v2158_v17, %v2052_v15  ;;  %v3552_v17 = vld [vmem:[%s5732_s9 + $0x138] sm:$0xff] }
 0x3cb   : > { %v2160_v21 = vpop.f32.mrf.mxu0 }
 0x3cc   : > { %v2170_v24 = vadd.f32 %v2160_v21, %v2053_v23  ;;  %v2185_v25 = vadd.f32 %v2178_v18, %v2169_v22  ;;  %v3538_v22 = vld [vmem:[%s5732_s9 + $0xd0] sm:$0xff]  ;;  %v3550_v23 = vld [vmem:[%s5732_s9 + $0x128] sm:$0xff]  ;;  %v3549_v21 = vld [vmem:[%s5732_s9 + $0x120] sm:$0xff] }
 0x3cd   : > { %v2164_v26 = vpop.f32.mrf.mxu0 }
 0x3ce   : > { %v2186_v27 = vadd.f32 %v2182_v20, %v2170_v24  ;;  %v2171_v0 = vadd.f32 %v2164_v26, %v2054_v38  ;;  %v2189_v37 = vmax.f32 %v2185_v25, 0.0  ;;  %v3536_v24 = vld [vmem:[%s5732_s9 + $0xc0] sm:$0xff]  ;;  %v3548_v38 = vld [vmem:[%s5732_s9 + $0x118] sm:$0xff]  ;;  %v3547_v25 = vld [vmem:[%s5732_s9 + $0x110] sm:$0xff] }
 0x3cf   : > { %v2166_v28 = vpop.f32.mrf.mxu0  ;;  %v3534_v26 = vld [vmem:[%s5732_s9 + $0xb0] sm:$0xff] }
 0x3d0   : > { %v2190_v29 = vmax.f32 %v2186_v27, 0.0  ;;  %v2172_v30 = vadd.f32 %v2166_v28, %v2055_v12  ;;  %v2187_v32 = vadd.f32 %v2178_v18, %v2171_v0  ;;  %v3539_v18 = vld [vmem:[%s5732_s9 + $0xd8] sm:$0xff]  ;;  %v3546_v27 = vld [vmem:[%s5732_s9 + $0x108] sm:$0xff]  ;;  %v3545_v12 = vld [vmem:[%s5732_s9 + $0x100] sm:$0xff] }
 0x3d1   : > { %v3533_v0 = vld [vmem:[%s5732_s9 + $0xa8] sm:$0xff]  ;;  %v3532_v28 = vld [vmem:[%s5732_s9 + $0xa0] sm:$0xff] }
 0x3d2   : > { %v2188_v33 = vadd.f32 %v2182_v20, %v2172_v30  ;;  %3491 = vmatprep.mubr.msk.f32.mxu1 %vm2213_vm8, %v2190_v29  ;;  %3513 = vmatprep.mubr.msk.f32.mxu0 %vm2213_vm8, %v2190_v29  ;;  %v2191_v40 = vmax.f32 %v2187_v32, 0.0  ;;  %v3537_v20 = vld [vmem:[%s5732_s9 + $0xc8] sm:$0xff]  ;;  %v3544_v29 = vld [vmem:[%s5732_s9 + $0xf8] sm:$0xff] }
 0x3d3   : > { %2285 = vmatmul.mubr.f32.vlgmr.msra.gmra.mxu1 %v2189_v37  ;;  %2381 = vmatmul.mubr.f32.vlgmr.msra.gmra.mxu0 %v2189_v37  ;;  %v3543_v37 = vld [vmem:[%s5732_s9 + $0xf0] sm:$0xff]  ;;  %v3563_v32 = vld [vmem:[%s5732_s9 + $0x188] sm:$0xff] }
 0x3d4   : > { %v2192_v31 = vmax.f32 %v2188_v33, 0.0  ;;  %3733 = vmatpush3.msra.mxu0 %v3530_v34  ;;  %v3560_v34 = vld [vmem:[%s5732_s9 + $0x170] sm:$0xff] }
 0x3d5   : > { %3734 = vmatprep.subr.mxu0 %v3985_v53 }
 0x3d6   : > { %3492 = vmatprep.mubr.msk.f32.mxu1 %vm2213_vm8, %v2192_v31  ;;  %3514 = vmatprep.mubr.msk.f32.mxu0 %vm2213_vm8, %v2192_v31  ;;  %v3562_v31 = vld [vmem:[%s5732_s9 + $0x180] sm:$0xff] }
 0x3d7   : > { %2290 = vmatmul.mubr.f32.gmra.mxu1 %v2191_v40  ;;  %2386 = vmatmul.mubr.f32.gmra.mxu0 %v2191_v40  ;;  %v3561_v40 = vld [vmem:[%s5732_s9 + $0x178] sm:$0xff] }
 0x3d8   : > { %3699 = vmatprep.mubr.msk.f32.mxu1 %vm3986_vm9, %v3985_v53  ;;  %3752 = vmatprep.mubr.msk.f32.mxu0 %vm3986_vm9, %v3985_v53 }
 0x3d9   : > { %3735 = vmatpush3.msra.mxu0 %v3529_v35  ;;  %v3559_v35 = vld [vmem:[%s5732_s9 + $0x168] sm:$0xff] }
 0x3da   : > { %3736 = vmatprep.subr.mxu0 %v3985_v53 }
 0x3db   : > { %3737 = vmatpush3.msra.mxu0 %v3528_v36  ;;  %v3558_v36 = vld [vmem:[%s5732_s9 + $0x160] sm:$0xff] }
 0x3dc   : > { %3738 = vmatprep.subr.mxu0 %v3985_v53 }
 0x3dd   : > { %3739 = vmatpush3.msra.mxu0 %v3527_v41  ;;  %v3557_v41 = vld [vmem:[%s5732_s9 + $0x158] sm:$0xff] }
 0x3de   : > { %3740 = vmatprep.subr.mxu0 %v3985_v53 }
 0x3df   : > { %3741 = vmatpush3.msra.mxu0 %v3526_v42  ;;  %v3556_v42 = vld [vmem:[%s5732_s9 + $0x150] sm:$0xff] }
 0x3e0   : > { %3742 = vmatprep.subr.mxu0 %v3985_v53 }
 0x3e1   : > { %3743 = vmatpush3.msra.mxu0 %v3525_v43  ;;  %v3555_v43 = vld [vmem:[%s5732_s9 + $0x148] sm:$0xff] }
 0x3e2   : > { %3744 = vmatprep.subr.mxu0 %v3985_v53 }
 0x3e3   : > { %3745 = vmatpush3.msra.mxu0 %v3524_v4  ;;  %v3073_v4 = vld [vmem:[%s5736_s13 + $0x38] sm:$0xff] }
 0x3e4   : > { %3746 = vmatprep.subr.mxu0 %v3985_v53 }
 0x3e5   : > { %3747 = vmatpush3.msra.mxu0 %v3523_v6  ;;  %v3071_v6 = vld [vmem:[%s5736_s13 + $0x28] sm:$0xff] }
 0x3e6   : > { %3748 = vmatprep.subr.mxu0 %v3985_v53 }
 0x3e7   : > { %3749 = vmatpush3.msra.mxu0 %v3522_v8  ;;  %v3069_v8 = vld [vmem:[%s5736_s13 + $0x18] sm:$0xff] }
 0x3e8   : > { %3750 = vmatprep.subr.mxu0 %v3985_v53 }
 0x3e9   : > { %3751 = vmatpush3.msra.mxu0 %v3521_v9 }
 0x3ea   : > { %3778 = vmatprep.subr.mxu0 %v3985_v53 }
 0x493   : > { %v2286_v44 = vpop.f32.mrf.mxu1  ;;  %v2382_v45 = vpop.f32.mrf.mxu0 }
 0x494   : > { %v2391_v54 = vmax.f32 %v2286_v44, %v2382_v45  ;;  %v3554_v44 = vld [vmem:[%s5732_s9 + $0x140] sm:$0xff] }
 0x495   : > { %v2288_v46 = vpop.f32.mrf.mxu1  ;;  %v2384_v47 = vpop.f32.mrf.mxu0 }
 0x496   : > { %v2989_v46 = vld [vmem:[%s5734_s11 + $0x70] sm:$0xff]  ;;  %v2988_v47 = vld [vmem:[%s5734_s11 + $0x68] sm:$0xff] }
 0x497   : > { %v2291_v48 = vpop.f32.mrf.mxu1  ;;  %v2387_v49 = vpop.f32.mrf.mxu0 }
 0x498   : > { %v2392_v50 = vmax.f32 %v2291_v48, %v2387_v49  ;;  %v2987_v48 = vld [vmem:[%s5734_s11 + $0x60] sm:$0xff]  ;;  %v2986_v49 = vld [vmem:[%s5734_s11 + $0x58] sm:$0xff] }
 0x499   : > { %v2293_v51 = vpop.f32.mrf.mxu1  ;;  %v2389_v52 = vpop.f32.mrf.mxu0 }
 0x49a   : > { %3696 = vmatpush3.msk.msra.mxu1 %vm2398_vm10, %v2392_v50  ;;  %v2984_v51 = vld [vmem:[%s5734_s11 + $0x48] sm:$0xff]  ;;  %v2983_v52 = vld [vmem:[%s5734_s11 + $0x40] sm:$0xff] }
 0x49b   : > { %3697 = vmatprep.subr.mxu1 %v3985_v53 }
 0x49c   : > { %3698 = vmatpush3.msra.mxu1 %v2391_v54 }
 0x49d   : > { %3700 = vmatmul.mubr.msk.f32.vlgmr.msra.gmra.mxu1 %vm2394_vm11, %v2393_v55  ;;  %3702 = vmatprep.subr.mxu1 %v3985_v53  ;;  %v2981_v55 = vld [vmem:[%s5734_s11 + $0x30] sm:$0xff] }
 0x49e   : > { %3703 = vmatpush3.msk.msra.mxu1 %vm2398_vm10, %v2392_v50  ;;  %3706 = vmatprep.mubr.msk.f32.mxu1 %vm3986_vm9, %v3985_v53  ;;  %v2985_v50 = vld [vmem:[%s5734_s11 + $0x50] sm:$0xff] }
 0x49f   : > { %3704 = vmatprep.subr.mxu1 %v3985_v53 }
 0x4a0   : > { %3705 = vmatpush3.msra.mxu1 %v2391_v54  ;;  %v2982_v54 = vld [vmem:[%s5734_s11 + $0x38] sm:$0xff] }
 0x4a1   : > { %3707 = vmatmul.mubr.msk.f32.vlgmr.msra.gmra.mxu1 %vm2394_vm11, %v3517_v57  ;;  %3709 = vmatprep.subr.mxu1 %v3985_v53  ;;  %v2980_v57 = vld [vmem:[%s5734_s11 + $0x28] sm:$0xff] }
 0x4a2   : > { %3710 = vmatpush3.msra.mxu1 %v2558_v59  ;;  %3729 = vmatprep.mubr.msk.f32.mxu1 %vm3986_vm9, %v3985_v53  ;;  %v2979_v59 = vld [vmem:[%s5734_s11 + $0x20] sm:$0xff] }
 0x4a3   : > { %3711 = vmatprep.subr.mxu1 %v3985_v53 }
 0x4a4   : > { %3712 = vmatpush3.msra.mxu1 %v2557_v60  ;;  %v2978_v60 = vld [vmem:[%s5734_s11 + $0x18] sm:$0xff] }
 0x4a5   : > { %3713 = vmatprep.subr.mxu1 %v3985_v53 }
 0x4a6   : > { %3714 = vmatpush3.msra.mxu1 %v2556_v61  ;;  %v2977_v61 = vld [vmem:[%s5734_s11 + $0x10] sm:$0xff] }
 0x4a7   : > { %3715 = vmatprep.subr.mxu1 %v3985_v53 }
 0x4a8   : > { %3716 = vmatpush3.msra.mxu1 %v2555_v62  ;;  %v2976_v62 = vld [vmem:[%s5734_s11 + $0x8] sm:$0xff] }
 0x4a9   : > { %3717 = vmatprep.subr.mxu1 %v3985_v53 }
 0x4aa   : > { %3718 = vmatpush3.msra.mxu1 %v2554_v63  ;;  %v2975_v63 = vld [vmem:[%s5734_s11] sm:$0xff] }
 0x4ab   : > { %3719 = vmatprep.subr.mxu1 %v3985_v53 }
 0x4ac   : > { %3720 = vmatpush3.msra.mxu1 %v2553_v1  ;;  %v3076_v1 = vld [vmem:[%s5736_s13 + $0x50] sm:$0xf] }
 0x4ad   : > { %3721 = vmatprep.subr.mxu1 %v3985_v53 }
 0x4ae   : > { %3722 = vmatpush3.msra.mxu1 %v2552_v2  ;;  %v3075_v2 = vld [vmem:[%s5736_s13 + $0x48] sm:$0xff] }
 0x4af   : > { %3723 = vmatprep.subr.mxu1 %v3985_v53 }
 0x4b0   : > { %3724 = vmatpush3.msra.mxu1 %v2551_v3  ;;  %v3074_v3 = vld [vmem:[%s5736_s13 + $0x40] sm:$0xff] }
 0x4b1   : > { %3725 = vmatprep.subr.mxu1 %v3985_v53 }
 0x4b2   : > { %3726 = vmatpush3.msra.mxu1 %v2550_v5  ;;  %v3072_v5 = vld [vmem:[%s5736_s13 + $0x30] sm:$0xff] }
 0x4b3   : > { %3727 = vmatprep.subr.mxu1 %v3985_v53 }
 0x4b4   : > { %3728 = vmatpush3.msra.mxu1 %v2549_v7  ;;  %v3070_v7 = vld [vmem:[%s5736_s13 + $0x20] sm:$0xff] }
 0x4b5   : > { %3755 = vmatprep.subr.mxu1 %v3985_v53 }
 0x55d   : > { %v2468_v10 = vpop.f32.mrf.mxu1 }
 0x55f   : > { %v3701_v11 = vpop.f32.mrf.mxu1 }
 0x561   : > { %v2543_v13 = vpop.f32.mrf.mxu1 }
 0x562   : > { %v5428_v14 = vmax.f32 %v2468_v10, %v2543_v13 }
 0x563   : > { %v3708_v56 = vpop.f32.mrf.mxu1 }
 0x564   : > { %v2645_v15 = vrot.slane %v5428_v14, 1  ;;  %3730 = vmatmul.mubr.msk.f32.vlgmr.msra.gmra.mxu1 %vm2559_vm12, %v5428_v14  ;;  %v2730_v30 = vrot.slane %v5428_v14, 2  ;;  %v2815_v33 = vrot.slane %v5428_v14, 3  ;;  %v2900_v45 = vrot.slane %v5428_v14, 4 }
 0x565   : > { %3756 = vmatpush3.msra.mxu1 %v3541_v58  ;;  %3775 = vmatprep.mubr.msk.f32.mxu1 %vm3986_vm9, %v3985_v53 }
 0x566   : > { %3757 = vmatprep.subr.mxu1 %v3985_v53  ;;  %3753 = vmatmul.mubr.msk.f32.vlgmr.msra.gmra.mxu0 %vm2559_vm12, %v2645_v15 }
 0x567   : > { %3758 = vmatpush3.msra.mxu1 %v3540_v16  ;;  %3779 = vmatpush3.msra.mxu0 %v3552_v17  ;;  %v2548_v16 = vld [vmem:[%s5733_s10] sm:$0x1] }
 0x568   : > { %3759 = vmatprep.subr.mxu1 %v3985_v53  ;;  %3780 = vmatprep.subr.mxu0 %v3985_v53 }
 0x569   : > { %3760 = vmatpush3.msra.mxu1 %v3539_v18  ;;  %3781 = vmatpush3.msra.mxu0 %v3551_v19 }
 0x56a   : > { %3761 = vmatprep.subr.mxu1 %v3985_v53  ;;  %3782 = vmatprep.subr.mxu0 %v3985_v53 }
 0x56b   : > { %3762 = vmatpush3.msra.mxu1 %v3538_v22  ;;  %3783 = vmatpush3.msra.mxu0 %v3550_v23 }
 0x56c   : > { %3763 = vmatprep.subr.mxu1 %v3985_v53  ;;  %3784 = vmatprep.subr.mxu0 %v3985_v53 }
 0x56d   : > { %3764 = vmatpush3.msra.mxu1 %v3537_v20  ;;  %3785 = vmatpush3.msra.mxu0 %v3549_v21 }
 0x56e   : > { %3765 = vmatprep.subr.mxu1 %v3985_v53  ;;  %3786 = vmatprep.subr.mxu0 %v3985_v53 }
 0x56f   : > { %3766 = vmatpush3.msra.mxu1 %v3536_v24  ;;  %3787 = vmatpush3.msra.mxu0 %v3548_v38  ;;  %v3068_v38 = vld [vmem:[%s5736_s13 + $0x10] sm:$0xff] }
 0x570   : > { %3767 = vmatprep.subr.mxu1 %v3985_v53  ;;  %3788 = vmatprep.subr.mxu0 %v3985_v53 }
 0x571   : > { %3768 = vmatpush3.msra.mxu1 %v3535_v39  ;;  %3789 = vmatpush3.msra.mxu0 %v3547_v25  ;;  %v3067_v39 = vld [vmem:[%s5736_s13 + $0x8] sm:$0xff]  ;;  %v3066_v25 = vld [vmem:[%s5736_s13] sm:$0xff] }
 0x572   : > { %3769 = vmatprep.subr.mxu1 %v3985_v53  ;;  %3790 = vmatprep.subr.mxu0 %v3985_v53 }
 0x573   : > { %3770 = vmatpush3.msra.mxu1 %v3534_v26  ;;  %3791 = vmatpush3.msra.mxu0 %v3546_v27  ;;  %v2990_v26 = vld [vmem:[%s5735_s12] sm:$0x1] }
 0x574   : > { %3771 = vmatprep.subr.mxu1 %v3985_v53  ;;  %3792 = vmatprep.subr.mxu0 %v3985_v53 }
 0x575   : > { %3772 = vmatpush3.msra.mxu1 %v3533_v0  ;;  %3793 = vmatpush3.msra.mxu0 %v3545_v12 }
 0x576   : > { %3773 = vmatprep.subr.mxu1 %v3985_v53  ;;  %3794 = vmatprep.subr.mxu0 %v3985_v53 }
 0x577   : > { %3774 = vmatpush3.msra.mxu1 %v3532_v28  ;;  %3795 = vmatpush3.msra.mxu0 %v3544_v29 }
 0x578   : > { %3776 = vmatmul.mubr.msk.f32.vlgmr.msra.gmra.mxu1 %vm2559_vm12, %v2730_v30  ;;  %3796 = vmatprep.subr.mxu0 %v3985_v53 }
 0x579   : > { %3801 = vmatprep.subr.mxu1 %v3985_v53  ;;  %3797 = vmatpush3.msra.mxu0 %v3543_v37 }
 0x57a   : > { %3798 = vmatprep.mubr.msk.f32.mxu0 %vm3986_vm9, %v3985_v53  ;;  %3802 = vmatpush3.msra.mxu1 %v3563_v32 }
 0x57b   : > { %3799 = vmatmul.mubr.msk.f32.vlgmr.msra.gmra.mxu0 %vm2559_vm12, %v2815_v33  ;;  %3803 = vmatprep.subr.mxu1 %v3985_v53 }
 0x57c   : > { %3804 = vmatpush3.msra.mxu1 %v3562_v31  ;;  %3821 = vmatprep.mubr.msk.f32.mxu1 %vm3986_vm9, %v3985_v53 }
 0x57d   : > { %3805 = vmatprep.subr.mxu1 %v3985_v53  ;;  %3824 = vmatprep.subr.mxu0 %v3985_v53 }
 0x57e   : > { %3806 = vmatpush3.msra.mxu1 %v3561_v40  ;;  %3854 = vmatprep.mubr.msk.f32.mxu0 %vm3986_vm9, %v3985_v53 }
 0x57f   : > { %3807 = vmatprep.subr.mxu1 %v3985_v53  ;;  %3825 = vmatpush3.msra.mxu0 %v2989_v46 }
 0x580   : > { %3808 = vmatpush3.msra.mxu1 %v3560_v34  ;;  %3826 = vmatprep.subr.mxu0 %v3985_v53 }
 0x581   : > { %3809 = vmatprep.subr.mxu1 %v3985_v53  ;;  %3827 = vmatpush3.msra.mxu0 %v2988_v47 }
 0x582   : > { %3810 = vmatpush3.msra.mxu1 %v3559_v35  ;;  %3828 = vmatprep.subr.mxu0 %v3985_v53 }
 0x583   : > { %3811 = vmatprep.subr.mxu1 %v3985_v53  ;;  %3829 = vmatpush3.msra.mxu0 %v2987_v48 }
 0x584   : > { %3812 = vmatpush3.msra.mxu1 %v3558_v36  ;;  %3830 = vmatprep.subr.mxu0 %v3985_v53 }
 0x585   : > { %3813 = vmatprep.subr.mxu1 %v3985_v53  ;;  %3831 = vmatpush3.msra.mxu0 %v2986_v49 }
 0x586   : > { %3814 = vmatpush3.msra.mxu1 %v3557_v41  ;;  %3832 = vmatprep.subr.mxu0 %v3985_v53 }
 0x587   : > { %3815 = vmatprep.subr.mxu1 %v3985_v53  ;;  %3833 = vmatpush3.msra.mxu0 %v2985_v50 }
 0x588   : > { %3816 = vmatpush3.msra.mxu1 %v3556_v42  ;;  %3834 = vmatprep.subr.mxu0 %v3985_v53 }
 0x589   : > { %3817 = vmatprep.subr.mxu1 %v3985_v53  ;;  %3835 = vmatpush3.msra.mxu0 %v2984_v51 }
 0x58a   : > { %3818 = vmatpush3.msra.mxu1 %v3555_v43  ;;  %3836 = vmatprep.subr.mxu0 %v3985_v53 }
 0x58b   : > { %3819 = vmatprep.subr.mxu1 %v3985_v53  ;;  %3837 = vmatpush3.msra.mxu0 %v2983_v52 }
 0x58c   : > { %3820 = vmatpush3.msra.mxu1 %v3554_v44  ;;  %3838 = vmatprep.subr.mxu0 %v3985_v53 }
 0x58d   : > { %3822 = vmatmul.mubr.msk.f32.vlgmr.msra.gmra.mxu1 %vm2559_vm12, %v2900_v45  ;;  %3857 = vmatprep.subr.mxu1 %v3985_v53 }
 0x58e   : > { %3879 = vmatprep.mubr.msk.f32.mxu1 %vm3986_vm9, %v3985_v53  ;;  %3839 = vmatpush3.msra.mxu0 %v2982_v54 }
 0x58f   : > { %3840 = vmatprep.subr.mxu0 %v3985_v53  ;;  %3858 = vmatpush3.msk.msra.mxu1 %vm1053_vm4, %v3076_v1 }
 0x590   : > { %3841 = vmatpush3.msra.mxu0 %v2981_v55  ;;  %3859 = vmatprep.subr.mxu1 %v3985_v53 }
 0x591   : > { %3842 = vmatprep.subr.mxu0 %v3985_v53  ;;  %3860 = vmatpush3.msra.mxu1 %v3075_v2 }
 0x592   : > { %3843 = vmatpush3.msra.mxu0 %v2980_v57  ;;  %3861 = vmatprep.subr.mxu1 %v3985_v53 }
 0x593   : > { %3844 = vmatprep.subr.mxu0 %v3985_v53  ;;  %3862 = vmatpush3.msra.mxu1 %v3074_v3 }
 0x594   : > { %3845 = vmatpush3.msra.mxu0 %v2979_v59  ;;  %3863 = vmatprep.subr.mxu1 %v3985_v53 }
 0x595   : > { %3846 = vmatprep.subr.mxu0 %v3985_v53  ;;  %3864 = vmatpush3.msra.mxu1 %v3073_v4 }
 0x596   : > { %3847 = vmatpush3.msra.mxu0 %v2978_v60  ;;  %3865 = vmatprep.subr.mxu1 %v3985_v53 }
 0x597   : > { %3848 = vmatprep.subr.mxu0 %v3985_v53  ;;  %3866 = vmatpush3.msra.mxu1 %v3072_v5 }
 0x598   : > { %3849 = vmatpush3.msra.mxu0 %v2977_v61  ;;  %3867 = vmatprep.subr.mxu1 %v3985_v53 }
 0x599   : > { %3850 = vmatprep.subr.mxu0 %v3985_v53  ;;  %3868 = vmatpush3.msra.mxu1 %v3071_v6 }
 0x59a   : > { %3851 = vmatpush3.msra.mxu0 %v2976_v62  ;;  %3869 = vmatprep.subr.mxu1 %v3985_v53 }
 0x59b   : > { %3852 = vmatprep.subr.mxu0 %v3985_v53  ;;  %3870 = vmatpush3.msra.mxu1 %v3070_v7 }
 0x59c   : > { %3853 = vmatpush3.msra.mxu0 %v2975_v63  ;;  %3871 = vmatprep.subr.mxu1 %v3985_v53 }
 0x59d   : > { %3872 = vmatpush3.msra.mxu1 %v3069_v8 }
 0x59e   : > { %3873 = vmatprep.subr.mxu1 %v3985_v53 }
 0x59f   : > { %3874 = vmatpush3.msra.mxu1 %v3068_v38 }
 0x5a0   : > { %3875 = vmatprep.subr.mxu1 %v3985_v53 }
 0x5a1   : > { %3876 = vmatpush3.msra.mxu1 %v3067_v39 }
 0x5a2   : > { %3877 = vmatprep.subr.mxu1 %v3985_v53  ;;  %v3077_v53 = vld [vmem:[%s5737_s14] sm:$0x1] }
 0x5a3   : > { %3878 = vmatpush3.msra.mxu1 %v3066_v25 }
 0x624   : > { %v2629_v9 = vpop.f32.mrf.mxu1 }
 0x625   : > { %v2633_v17 = vadd.f32 %v2629_v9, %v2548_v16 }
 0x626   : > { %v3731_v10 = vpop.f32.mrf.mxu1  ;;  %v2714_v11 = vpop.f32.mrf.mxu0 }
 0x627   : > { %v2718_v18 = vadd.f32 %v2714_v11, %v2633_v17 }
 0x628   : > { %v3754_v13 = vpop.f32.mrf.mxu0 }
 0x638   : > { %v2799_v14 = vpop.f32.mrf.mxu1 }
 0x639   : > { %v2803_v19 = vadd.f32 %v2799_v14, %v2718_v18 }
 0x63a   : > { %v3777_v58 = vpop.f32.mrf.mxu1 }
 0x63b   : > { %v2884_v56 = vpop.f32.mrf.mxu0 }
 0x63c   : > { %v2888_v22 = vadd.f32 %v2884_v56, %v2803_v19 }
 0x63d   : > { %v3800_v15 = vpop.f32.mrf.mxu0 }
 0x64d   : > { %v2969_v23 = vpop.f32.mrf.mxu1 }
 0x64e   : > { %v2973_v20 = vadd.f32 %v2969_v23, %v2888_v22 }
 0x64f   : > { %v3823_v21 = vpop.f32.mrf.mxu1 }
 0x650   : > { %v2974_v24 = vmax.f32 %v2973_v20, 0.0 }
 0x652   : > { %3855 = vmatmul.mubr.msk.f32.vlgmr.msra.gmra.mxu0 %vm2991_vm13, %v2974_v24 }
 0x712   : > { %v3061_v27 = vpop.f32.mrf.mxu0 }
 0x713   : > { %v3062_v0 = vadd.f32 %v3061_v27, %v2990_v26 }
 0x714   : > { %v3856_v12 = vpop.f32.mrf.mxu0 }
 0x715   : > { %v3065_v28 = vmax.f32 %v3062_v0, 0.0 }
 0x717   : > { %3880 = vmatmul.mubr.msk.f32.vlgmr.msra.gmra.mxu1 %vm1647_vm7, %v3065_v28 }
 0x7d7   : > { %v3150_v29 = vpop.f32.mrf.mxu1 }
 0x7d8   : > { %v3151_v30 = vadd.f32 %v3150_v29, %v3077_v53 }
 0x7d9   : > { %v3881_v37 = vpop.f32.mrf.mxu1 }
 0x7da   : > { %3155 = vst.msk [vmem:[%s486_s21] sm:$0x1] %vm3154_vm14, %v3151_v30 }
 0x7db   : > { %3936 = shalt.err (!%p3933_p3)
}
 0x7dc   : > { %s3937_s18 = scalar_lea.hbm %s5688_s30, 16  ;;  %s3941_s21 = scalar_lea.hbm %s5738_s15, 32 }
 0x7dd   : > { %p3938_p4 = scmp.ne.s32.totalorder %s5688_s30, %s3937_s18  ;;  %p3942_p9 = scmp.lt.s32.totalorder %s5688_s30, %s5738_s15 }
 0x7de   : > { %p3943_p10 = scmp.lt.s32.totalorder %s3941_s21, %s3937_s18 }
 0x7df   : > { %p3939_p7 = pnand %p3938_p4, %p4106_p5 }
 0x7e0   : > { %p3944_p11 = por %p3943_p10, %p3942_p9 }
 0x7e1   : > { %p3940_p8 = pneg %p3939_p7 }
 0x7e3   : > { %p3945_p12 = pnand %p3944_p11, %p3940_p8 }
 0x7e5   : > { %3948 = shalt.err (!%p3945_p12)
}
 0x7e6   : > { %3882 = dma.vmem_to_hbm [thread:$0]  (%p4106_p5), %s3170_s27, 16, %s5688_s30, %s3157_s16  }
 0x7e7 PF: > { %s5753_s20 = sld [smem:[#allocation7_spill]] }
 0x7e8   : > { %s5754_s22 = sld [smem:[#allocation5_spill]] }
 0x7ed   : > { %p3888_p13 = scmp.ge.s32.totalorder %s5753_s20, 2 }
 0x7ee   : > { %s3181_s25 = sand.u32 1, %s5754_s22  }
 0x7ef   : > { %p3885_p0 = pnand %p3888_p13, %p4110_p6  ;;  %s3182_s23 = scalar_lea.sflag [#allocation3], %s3181_s25 }
 0x7f1   : > { %p3886_p1 = pneg %p3885_p0 }
 0x7f3   : > { %3966 = dma.done.wait (%p3886_p1), %s3182_s23, 16  }
 0x7f4   : > { %3968 = vsyncadd (%p3886_p1), %s3182_s23, 4294967280  ;;  %s5756_s21 = sld [smem:[#allocation8_spill]]  ;;  %s5759_s18 = smov %s3975_s19 }
 0x7f5   : > { %s5757_s26 = sld [smem:[#allocation6_spill]] }
 0x7f6   : > { %s5758_s20 = sld [smem:[#allocation9_spill]] }
 0x7fa   : > { %p25_p2 = scmp.ge.s32.totalorder %s5756_s21, 4  }
 0x7fb   : > { %s5760_s19 = smov %s5757_s26 }
 0x7fc   :  { %27 = sbr.rel (!%p25_p2) target bundleno = 3 (0x3), region = 131 }
 0x801   :  { %3186 = vsyncpa [#allocation3], 1 }
 0x802   :  { %3188 = vsyncpa [#allocation3 + $0x1], 1 }

</bundles_post_ra>
